<compile_context>
chip_gen: v7x
topology: tpu7x:2x2x1
jax: 0.10.0
libtpu: 0.0.40
codegen_flags: <defaults>
</compile_context>

<pallas_src>
import math

import jax
import jax.numpy as jnp
from jax.experimental import pallas as pl
from jax.experimental.pallas import tpu as pltpu

# Matmul dtype for the hoisted x-projection (and its weights). Set to jnp.bfloat16 on v6e/v7x
# for ~2x MXU throughput on that projection (accumulation stays f32; h/c state stays f32).
COMPUTE_DTYPE = jnp.float32


def bilstm_sum_kernel(x_ref, wx_ref, wh_ref, b_ref,        # inputs
                      out_ref, hn_ref, cn_ref,             # outputs
                      gxf_ref, gxb_ref, hf_ref, hb_ref):   # VMEM scratch
    """Fused bidirectional single-layer LSTM, whole sequence resident in VMEM.

    x_ref:   (T*B, E)   embedded inputs, time-major rows (row t*B+b = x[t, b])
    wx_ref:  (E, 8H)    [W_ih_fwd^T | W_ih_bwd^T], gate order (i, f, g, o) per half
    wh_ref:  (2H, 8H)   block-diagonal: rows 0:H (fwd h) -> cols 0:4H, rows H:2H (bwd h) -> cols 4H:8H
    b_ref:   (1, 8H)    [b_fwd | b_bwd], combined b_ih + b_hh
    out_ref: (T, B, H)  fwd + bwd summed outputs
    hn_ref:  (2, B, H)  final hidden state per direction
    cn_ref:  (2, B, H)  final cell state per direction
    gxf/gxb: (T, B, 4H) precomputed x-projections (+bias) per direction
    hf/hb:   (T, B, H)  per-direction hidden outputs (bwd stored at its original time index)
    """
    T, B, H = out_ref.shape
    G = 4 * H

    # ---- Hoisted, time-parallel input projection: one big matmul for both directions. ----
    gx = jnp.dot(x_ref[...], wx_ref[...],
                 preferred_element_type=jnp.float32) + b_ref[...]        # (T*B, 8H) f32
    # One-time unpack into per-direction (T, B, 4H) scratch (outside the recurrence;
    # static slices only -> no per-step dynamic sublane slicing inside the loop).
    for t in range(T):
        gxf_ref[t] = gx[t * B:(t + 1) * B, 0:G]
        gxb_ref[t] = gx[t * B:(t + 1) * B, G:2 * G]

    w_h = wh_ref[...]  # (2H, 8H), hoisted load

    # ---- Fused fwd/bwd recurrence. Carry layout: [fwd | bwd] along the lane dim. ----
    def step(t, carry):
        h_cat, c_cat = carry                      # (B, 2H) each
        rt = T - 1 - t
        gf = gxf_ref[t]                           # (B, 4H) fwd x-proj at time t       (128 lanes)
        gb = gxb_ref[rt]                          # (B, 4H) bwd x-proj at time T-1-t   (128 lanes)
        gates = (jnp.concatenate([gf, gb], axis=-1)
                 + jnp.dot(h_cat, w_h, preferred_element_type=jnp.float32))   # (B, 8H)

        # Full-width nonlinearities on the EUP (own bundle slot), then per-gate lane slices.
        sg = jax.nn.sigmoid(gates)
        th = jnp.tanh(gates)

        i_cat = jnp.concatenate([sg[:, 0 * H:1 * H], sg[:, G + 0 * H:G + 1 * H]], axis=-1)
        f_cat = jnp.concatenate([sg[:, 1 * H:2 * H], sg[:, G + 1 * H:G + 2 * H]], axis=-1)
        g_cat = jnp.concatenate([th[:, 2 * H:3 * H], th[:, G + 2 * H:G + 3 * H]], axis=-1)
        o_cat = jnp.concatenate([sg[:, 3 * H:4 * H], sg[:, G + 3 * H:G + 4 * H]], axis=-1)

        c_new = f_cat * c_cat + i_cat * g_cat     # (B, 2H), f32 state
        h_new = o_cat * jnp.tanh(c_new)

        hf_ref[t] = h_new[:, 0:H]                 # fwd output belongs to time t
        hb_ref[rt] = h_new[:, H:2 * H]            # bwd output belongs to time T-1-t
        return (h_new, c_new)

    h0 = jnp.zeros((B, 2 * H), jnp.float32)
    c0 = jnp.zeros((B, 2 * H), jnp.float32)
    h_fin, c_fin = jax.lax.fori_loop(0, T, step, (h0, c0), unroll=True)

    # Final states per direction (PyTorch layout: [fwd, bwd]).
    hn_ref[0] = h_fin[:, 0:H]
    hn_ref[1] = h_fin[:, H:2 * H]
    cn_ref[0] = c_fin[:, 0:H]
    cn_ref[1] = c_fin[:, H:2 * H]

    # Single bulk streaming add instead of per-step output read-modify-write.
    out_ref[...] = hf_ref[...] + hb_ref[...]


def init_encoder_params(key, vocab_size, embedding_size, hidden_size):
    """Deterministic parameter init mirroring the PyTorch module, pre-fused for the kernel."""
    k_emb, k_wih, k_whh, k_bih, k_bhh = jax.random.split(key, 5)
    E, H = embedding_size, hidden_size
    G = 4 * H

    # nn.init.xavier_uniform_ on the embedding weight.
    bound = math.sqrt(6.0 / (vocab_size + E))
    embedding = jax.random.uniform(k_emb, (vocab_size, E), jnp.float32, -bound, bound)

    # PyTorch LSTM default init: U(-1/sqrt(H), 1/sqrt(H)), gate order (i, f, g, o).
    stdv = 1.0 / math.sqrt(H)
    w_ih = jax.random.uniform(k_wih, (2, G, E), jnp.float32, -stdv, stdv)
    w_hh = jax.random.uniform(k_whh, (2, G, H), jnp.float32, -stdv, stdv)
    b_ih = jax.random.uniform(k_bih, (2, G), jnp.float32, -stdv, stdv)
    b_hh = jax.random.uniform(k_bhh, (2, G), jnp.float32, -stdv, stdv)

    # Fused input-projection weights: [W_ih_fwd^T | W_ih_bwd^T] -> (E, 8H).
    w_x = jnp.concatenate([w_ih[0].T, w_ih[1].T], axis=1)
    # Block-diagonal recurrent weights (2H, 8H): fwd h feeds only fwd gate columns, bwd only bwd.
    zeros = jnp.zeros((H, G), jnp.float32)
    w_h = jnp.concatenate(
        [jnp.concatenate([w_hh[0].T, zeros], axis=1),
         jnp.concatenate([zeros, w_hh[1].T], axis=1)], axis=0)
    bias = (b_ih + b_hh).reshape(1, 2 * G)            # (1, 8H): [b_fwd | b_bwd]

    return {"embedding": embedding, "w_x": w_x, "w_h": w_h, "bias": bias}


def encoder_forward(params, input_ids, input_len):
    """input_ids: (T, B) int32 time-major; input_len unused (config.packed == False)."""
    del input_len  # TODO(synk): packed=True length masking not implemented.
    T, B = input_ids.shape
    E = params["embedding"].shape[1]
    H = params["w_h"].shape[0] // 2
    G = 4 * H

    # Embedding gather + (identity at inference) dropout in plain JAX.
    # TODO(synk): could be fused in-kernel via PrefetchScalarGridSpec row-gather to save one
    #             (T, B, E) HBM round-trip; kept in XLA for robustness at these shapes.
    embedded = jnp.take(params["embedding"], input_ids, axis=0)          # (T, B, E) f32
    x_flat = embedded.reshape(T * B, E).astype(COMPUTE_DTYPE)            # time-major rows

    vmem = pl.BlockSpec(memory_space=pltpu.MemorySpace.VMEM)

    itemsize_x = jnp.dtype(COMPUTE_DTYPE).itemsize
    flops = 2 * (T * B) * E * (2 * G) + 2 * T * B * (2 * H) * (2 * G)
    transcendentals = T * B * (2 * 2 * G + 2 * H)
    bytes_accessed = (itemsize_x * (T * B * E + E * 2 * G)
                      + 4 * (2 * H * 2 * G + 2 * G + T * B * H + 4 * B * H + 4 * B * H))

    outputs, h_n, c_n = pl.pallas_call(
        bilstm_sum_kernel,
        out_shape=(
            jax.ShapeDtypeStruct((T, B, H), jnp.float32),    # summed outputs
            jax.ShapeDtypeStruct((2, B, H), jnp.float32),    # h_n
            jax.ShapeDtypeStruct((2, B, H), jnp.float32),    # c_n
        ),
        in_specs=[vmem, vmem, vmem, vmem],
        out_specs=(vmem, vmem, vmem),
        scratch_shapes=[
            pltpu.VMEM((T, B, G), jnp.float32),   # gxf: fwd x-projections
            pltpu.VMEM((T, B, G), jnp.float32),   # gxb: bwd x-projections
            pltpu.VMEM((T, B, H), jnp.float32),   # hf:  fwd hidden sequence
            pltpu.VMEM((T, B, H), jnp.float32),   # hb:  bwd hidden sequence
        ],
        compiler_params=pltpu.CompilerParams(vmem_limit_bytes=32 * 1024 * 1024),
        cost_estimate=pl.CostEstimate(flops=flops, transcendentals=transcendentals,
                                      bytes_accessed=bytes_accessed),
    )(x_flat, params["w_x"].astype(COMPUTE_DTYPE), params["w_h"], params["bias"])

    return outputs, (h_n, c_n)


def encoder_forward_reference(params, input_ids):
    """Pure-JAX reference of the packed=False Encoder forward (self-check only)."""
    T, B = input_ids.shape
    H = params["w_h"].shape[0] // 2
    G = 4 * H
    emb = jnp.take(params["embedding"], input_ids, axis=0)               # (T, B, E)
    w_x, w_h, bias = params["w_x"], params["w_h"], params["bias"]
    hi = jax.lax.Precision.HIGHEST

    def run_dir(d):
        wx_d = w_x[:, d * G:(d + 1) * G]
        wh_d = w_h[d * H:(d + 1) * H, d * G:(d + 1) * G]
        b_d = bias[0, d * G:(d + 1) * G]
        xs = emb if d == 0 else emb[::-1]

        def step(carry, x_t):
            h, c = carry
            g = jnp.dot(x_t, wx_d, precision=hi) + jnp.dot(h, wh_d, precision=hi) + b_d
            i = jax.nn.sigmoid(g[:, 0:H])
            f = jax.nn.sigmoid(g[:, H:2 * H])
            gg = jnp.tanh(g[:, 2 * H:3 * H])
            o = jax.nn.sigmoid(g[:, 3 * H:4 * H])
            c = f * c + i * gg
            h = o * jnp.tanh(c)
            return (h, c), h

        (h_f, c_f), hs = jax.lax.scan(step, (jnp.zeros((B, H)), jnp.zeros((B, H))), xs)
        if d == 1:
            hs = hs[::-1]
        return hs, h_f, c_f

    hs0, h0, c0 = run_dir(0)
    hs1, h1, c1 = run_dir(1)
    return hs0 + hs1, (jnp.stack([h0, h1]), jnp.stack([c0, c1]))


if __name__ == "__main__":
    # Small shapes consistent with the module: vocab=20, E=16, H=32, num_layers=1, T=8, B=2.
    VOCAB, E, H, T, B = 20, 16, 32, 8, 2

    key = jax.random.PRNGKey(0)
    k_params, k_ids = jax.random.split(key)
    params = init_encoder_params(k_params, VOCAB, E, H)

    input_ids = jax.random.randint(k_ids, (T, B), 0, VOCAB, dtype=jnp.int32)  # (T, B) time-major
    input_len = jnp.array([T, T - 2], dtype=jnp.int32)                        # unused (packed=False)

    outputs, (h_n, c_n) = encoder_forward(params, input_ids, input_len)
    jax.block_until_ready((outputs, h_n, c_n))

    assert outputs.shape == (T, B, H)
    assert h_n.shape == (2, B, H) and c_n.shape == (2, B, H)

    # Self-check against a pure-JAX reference (f32 path).
    out_r, (hn_r, cn_r) = encoder_forward_reference(params, input_ids)
    assert float(jnp.max(jnp.abs(outputs - out_r))) < 1e-3
    assert float(jnp.max(jnp.abs(h_n - hn_r))) < 1e-3
    assert float(jnp.max(jnp.abs(c_n - cn_r))) < 1e-3

    print("KERNEL_OK")
</pallas_src>

<mosaic_0001>
module attributes {stable_mosaic.version = 11 : i64} {
  func.func @bilstm_sum_kernel(%arg0: memref<16x16xf32, #tpu.memory_space<vmem>>, %arg1: memref<16x256xf32, #tpu.memory_space<vmem>>, %arg2: memref<64x256xf32, #tpu.memory_space<vmem>>, %arg3: memref<1x256xf32, #tpu.memory_space<vmem>>, %arg4: memref<8x2x32xf32, #tpu.memory_space<vmem>>, %arg5: memref<2x2x32xf32, #tpu.memory_space<vmem>>, %arg6: memref<2x2x32xf32, #tpu.memory_space<vmem>>, %arg7: memref<8x2x128xf32, #tpu.memory_space<vmem>>, %arg8: memref<8x2x128xf32, #tpu.memory_space<vmem>>, %arg9: memref<8x2x32xf32, #tpu.memory_space<vmem>>, %arg10: memref<8x2x32xf32, #tpu.memory_space<vmem>>) attributes {dimension_semantics = [], scalar_prefetch = 0 : i64, scratch_operands = 4 : i64, tpu.core_type = #tpu.core_type<tc>} {
    %c0 = arith.constant 0 : index
    %c0_0 = arith.constant 0 : index
    %0 = vector.load %arg0[%c0, %c0_0] : memref<16x16xf32, #tpu.memory_space<vmem>>, vector<16x16xf32>
    %c0_1 = arith.constant 0 : index
    %c0_2 = arith.constant 0 : index
    %1 = vector.load %arg1[%c0_1, %c0_2] : memref<16x256xf32, #tpu.memory_space<vmem>>, vector<16x256xf32>
    %cst = arith.constant dense<0.000000e+00> : vector<16x256xf32>
    %2 = tpu.matmul %0, %1, %cst {dimension_numbers = #tpu.dot_dimension_numbers<[1], [0], [0], [1], [0, 0, 1, 1], [], []>} : vector<16x16xf32>, vector<16x256xf32>, vector<16x256xf32> -> vector<16x256xf32>
    %c0_3 = arith.constant 0 : index
    %c0_4 = arith.constant 0 : index
    %3 = vector.load %arg3[%c0_3, %c0_4] : memref<1x256xf32, #tpu.memory_space<vmem>>, vector<1x256xf32>
    %4 = vector.broadcast %3 : vector<1x256xf32> to vector<16x256xf32>
    %5 = arith.addf %2, %4 : vector<16x256xf32>
    %6 = vector.extract_strided_slice %5 {offsets = [0, 0], sizes = [2, 128], strides = [1, 1]} : vector<16x256xf32> to vector<2x128xf32>
    %c0_5 = arith.constant 0 : index
    %c0_6 = arith.constant 0 : index
    %c0_7 = arith.constant 0 : index
    %7 = vector.load %arg7[%c0_5, %c0_6, %c0_7] : memref<8x2x128xf32, #tpu.memory_space<vmem>>, vector<1x2x128xf32>
    %8 = vector.shape_cast %7 : vector<1x2x128xf32> to vector<2x128xf32>
    %9 = vector.shape_cast %6 : vector<2x128xf32> to vector<1x2x128xf32>
    tpu.vector_store %arg7[%c0_5, %c0_6, %c0_7], %9 {strides = array<i32>} : memref<8x2x128xf32, #tpu.memory_space<vmem>>, vector<1x2x128xf32>,
    %10 = vector.extract_strided_slice %5 {offsets = [0, 128], sizes = [2, 128], strides = [1, 1]} : vector<16x256xf32> to vector<2x128xf32>
    %c0_8 = arith.constant 0 : index
    %c0_9 = arith.constant 0 : index
    %c0_10 = arith.constant 0 : index
    %11 = vector.load %arg8[%c0_8, %c0_9, %c0_10] : memref<8x2x128xf32, #tpu.memory_space<vmem>>, vector<1x2x128xf32>
    %12 = vector.shape_cast %11 : vector<1x2x128xf32> to vector<2x128xf32>
    %13 = vector.shape_cast %10 : vector<2x128xf32> to vector<1x2x128xf32>
    tpu.vector_store %arg8[%c0_8, %c0_9, %c0_10], %13 {strides = array<i32>} : memref<8x2x128xf32, #tpu.memory_space<vmem>>, vector<1x2x128xf32>,
    %14 = vector.extract_strided_slice %5 {offsets = [2, 0], sizes = [2, 128], strides = [1, 1]} : vector<16x256xf32> to vector<2x128xf32>
    %c1 = arith.constant 1 : index
    %c0_11 = arith.constant 0 : index
    %c0_12 = arith.constant 0 : index
    %15 = vector.load %arg7[%c1, %c0_11, %c0_12] : memref<8x2x128xf32, #tpu.memory_space<vmem>>, vector<1x2x128xf32>
    %16 = vector.shape_cast %15 : vector<1x2x128xf32> to vector<2x128xf32>
    %17 = vector.shape_cast %14 : vector<2x128xf32> to vector<1x2x128xf32>
    tpu.vector_store %arg7[%c1, %c0_11, %c0_12], %17 {strides = array<i32>} : memref<8x2x128xf32, #tpu.memory_space<vmem>>, vector<1x2x128xf32>,
    %18 = vector.extract_strided_slice %5 {offsets = [2, 128], sizes = [2, 128], strides = [1, 1]} : vector<16x256xf32> to vector<2x128xf32>
    %c1_13 = arith.constant 1 : index
    %c0_14 = arith.constant 0 : index
    %c0_15 = arith.constant 0 : index
    %19 = vector.load %arg8[%c1_13, %c0_14, %c0_15] : memref<8x2x128xf32, #tpu.memory_space<vmem>>, vector<1x2x128xf32>
    %20 = vector.shape_cast %19 : vector<1x2x128xf32> to vector<2x128xf32>
    %21 = vector.shape_cast %18 : vector<2x128xf32> to vector<1x2x128xf32>
    tpu.vector_store %arg8[%c1_13, %c0_14, %c0_15], %21 {strides = array<i32>} : memref<8x2x128xf32, #tpu.memory_space<vmem>>, vector<1x2x128xf32>,
    %22 = vector.extract_strided_slice %5 {offsets = [4, 0], sizes = [2, 128], strides = [1, 1]} : vector<16x256xf32> to vector<2x128xf32>
    %c2 = arith.constant 2 : index
    %c0_16 = arith.constant 0 : index
    %c0_17 = arith.constant 0 : index
    %23 = vector.load %arg7[%c2, %c0_16, %c0_17] : memref<8x2x128xf32, #tpu.memory_space<vmem>>, vector<1x2x128xf32>
    %24 = vector.shape_cast %23 : vector<1x2x128xf32> to vector<2x128xf32>
    %25 = vector.shape_cast %22 : vector<2x128xf32> to vector<1x2x128xf32>
    tpu.vector_store %arg7[%c2, %c0_16, %c0_17], %25 {strides = array<i32>} : memref<8x2x128xf32, #tpu.memory_space<vmem>>, vector<1x2x128xf32>,
    %26 = vector.extract_strided_slice %5 {offsets = [4, 128], sizes = [2, 128], strides = [1, 1]} : vector<16x256xf32> to vector<2x128xf32>
    %c2_18 = arith.constant 2 : index
    %c0_19 = arith.constant 0 : index
    %c0_20 = arith.constant 0 : index
    %27 = vector.load %arg8[%c2_18, %c0_19, %c0_20] : memref<8x2x128xf32, #tpu.memory_space<vmem>>, vector<1x2x128xf32>
    %28 = vector.shape_cast %27 : vector<1x2x128xf32> to vector<2x128xf32>
    %29 = vector.shape_cast %26 : vector<2x128xf32> to vector<1x2x128xf32>
    tpu.vector_store %arg8[%c2_18, %c0_19, %c0_20], %29 {strides = array<i32>} : memref<8x2x128xf32, #tpu.memory_space<vmem>>, vector<1x2x128xf32>,
    %30 = vector.extract_strided_slice %5 {offsets = [6, 0], sizes = [2, 128], strides = [1, 1]} : vector<16x256xf32> to vector<2x128xf32>
    %c3 = arith.constant 3 : index
    %c0_21 = arith.constant 0 : index
    %c0_22 = arith.constant 0 : index
    %31 = vector.load %arg7[%c3, %c0_21, %c0_22] : memref<8x2x128xf32, #tpu.memory_space<vmem>>, vector<1x2x128xf32>
    %32 = vector.shape_cast %31 : vector<1x2x128xf32> to vector<2x128xf32>
    %33 = vector.shape_cast %30 : vector<2x128xf32> to vector<1x2x128xf32>
    tpu.vector_store %arg7[%c3, %c0_21, %c0_22], %33 {strides = array<i32>} : memref<8x2x128xf32, #tpu.memory_space<vmem>>, vector<1x2x128xf32>,
    %34 = vector.extract_strided_slice %5 {offsets = [6, 128], sizes = [2, 128], strides = [1, 1]} : vector<16x256xf32> to vector<2x128xf32>
    %c3_23 = arith.constant 3 : index
    %c0_24 = arith.constant 0 : index
    %c0_25 = arith.constant 0 : index
    %35 = vector.load %arg8[%c3_23, %c0_24, %c0_25] : memref<8x2x128xf32, #tpu.memory_space<vmem>>, vector<1x2x128xf32>
    %36 = vector.shape_cast %35 : vector<1x2x128xf32> to vector<2x128xf32>
    %37 = vector.shape_cast %34 : vector<2x128xf32> to vector<1x2x128xf32>
    tpu.vector_store %arg8[%c3_23, %c0_24, %c0_25], %37 {strides = array<i32>} : memref<8x2x128xf32, #tpu.memory_space<vmem>>, vector<1x2x128xf32>,
    %38 = vector.extract_strided_slice %5 {offsets = [8, 0], sizes = [2, 128], strides = [1, 1]} : vector<16x256xf32> to vector<2x128xf32>
    %c4 = arith.constant 4 : index
    %c0_26 = arith.constant 0 : index
    %c0_27 = arith.constant 0 : index
    %39 = vector.load %arg7[%c4, %c0_26, %c0_27] : memref<8x2x128xf32, #tpu.memory_space<vmem>>, vector<1x2x128xf32>
    %40 = vector.shape_cast %39 : vector<1x2x128xf32> to vector<2x128xf32>
    %41 = vector.shape_cast %38 : vector<2x128xf32> to vector<1x2x128xf32>
    tpu.vector_store %arg7[%c4, %c0_26, %c0_27], %41 {strides = array<i32>} : memref<8x2x128xf32, #tpu.memory_space<vmem>>, vector<1x2x128xf32>,
    %42 = vector.extract_strided_slice %5 {offsets = [8, 128], sizes = [2, 128], strides = [1, 1]} : vector<16x256xf32> to vector<2x128xf32>
    %c4_28 = arith.constant 4 : index
    %c0_29 = arith.constant 0 : index
    %c0_30 = arith.constant 0 : index
    %43 = vector.load %arg8[%c4_28, %c0_29, %c0_30] : memref<8x2x128xf32, #tpu.memory_space<vmem>>, vector<1x2x128xf32>
    %44 = vector.shape_cast %43 : vector<1x2x128xf32> to vector<2x128xf32>
    %45 = vector.shape_cast %42 : vector<2x128xf32> to vector<1x2x128xf32>
    tpu.vector_store %arg8[%c4_28, %c0_29, %c0_30], %45 {strides = array<i32>} : memref<8x2x128xf32, #tpu.memory_space<vmem>>, vector<1x2x128xf32>,
    %46 = vector.extract_strided_slice %5 {offsets = [10, 0], sizes = [2, 128], strides = [1, 1]} : vector<16x256xf32> to vector<2x128xf32>
    %c5 = arith.constant 5 : index
    %c0_31 = arith.constant 0 : index
    %c0_32 = arith.constant 0 : index
    %47 = vector.load %arg7[%c5, %c0_31, %c0_32] : memref<8x2x128xf32, #tpu.memory_space<vmem>>, vector<1x2x128xf32>
    %48 = vector.shape_cast %47 : vector<1x2x128xf32> to vector<2x128xf32>
    %49 = vector.shape_cast %46 : vector<2x128xf32> to vector<1x2x128xf32>
    tpu.vector_store %arg7[%c5, %c0_31, %c0_32], %49 {strides = array<i32>} : memref<8x2x128xf32, #tpu.memory_space<vmem>>, vector<1x2x128xf32>,
    %50 = vector.extract_strided_slice %5 {offsets = [10, 128], sizes = [2, 128], strides = [1, 1]} : vector<16x256xf32> to vector<2x128xf32>
    %c5_33 = arith.constant 5 : index
    %c0_34 = arith.constant 0 : index
    %c0_35 = arith.constant 0 : index
    %51 = vector.load %arg8[%c5_33, %c0_34, %c0_35] : memref<8x2x128xf32, #tpu.memory_space<vmem>>, vector<1x2x128xf32>
    %52 = vector.shape_cast %51 : vector<1x2x128xf32> to vector<2x128xf32>
    %53 = vector.shape_cast %50 : vector<2x128xf32> to vector<1x2x128xf32>
    tpu.vector_store %arg8[%c5_33, %c0_34, %c0_35], %53 {strides = array<i32>} : memref<8x2x128xf32, #tpu.memory_space<vmem>>, vector<1x2x128xf32>,
    %54 = vector.extract_strided_slice %5 {offsets = [12, 0], sizes = [2, 128], strides = [1, 1]} : vector<16x256xf32> to vector<2x128xf32>
    %c6 = arith.constant 6 : index
    %c0_36 = arith.constant 0 : index
    %c0_37 = arith.constant 0 : index
    %55 = vector.load %arg7[%c6, %c0_36, %c0_37] : memref<8x2x128xf32, #tpu.memory_space<vmem>>, vector<1x2x128xf32>
    %56 = vector.shape_cast %55 : vector<1x2x128xf32> to vector<2x128xf32>
    %57 = vector.shape_cast %54 : vector<2x128xf32> to vector<1x2x128xf32>
    tpu.vector_store %arg7[%c6, %c0_36, %c0_37], %57 {strides = array<i32>} : memref<8x2x128xf32, #tpu.memory_space<vmem>>, vector<1x2x128xf32>,
    %58 = vector.extract_strided_slice %5 {offsets = [12, 128], sizes = [2, 128], strides = [1, 1]} : vector<16x256xf32> to vector<2x128xf32>
    %c6_38 = arith.constant 6 : index
    %c0_39 = arith.constant 0 : index
    %c0_40 = arith.constant 0 : index
    %59 = vector.load %arg8[%c6_38, %c0_39, %c0_40] : memref<8x2x128xf32, #tpu.memory_space<vmem>>, vector<1x2x128xf32>
    %60 = vector.shape_cast %59 : vector<1x2x128xf32> to vector<2x128xf32>
    %61 = vector.shape_cast %58 : vector<2x128xf32> to vector<1x2x128xf32>
    tpu.vector_store %arg8[%c6_38, %c0_39, %c0_40], %61 {strides = array<i32>} : memref<8x2x128xf32, #tpu.memory_space<vmem>>, vector<1x2x128xf32>,
    %62 = vector.extract_strided_slice %5 {offsets = [14, 0], sizes = [2, 128], strides = [1, 1]} : vector<16x256xf32> to vector<2x128xf32>
    %c7 = arith.constant 7 : index
    %c0_41 = arith.constant 0 : index
    %c0_42 = arith.constant 0 : index
    %63 = vector.load %arg7[%c7, %c0_41, %c0_42] : memref<8x2x128xf32, #tpu.memory_space<vmem>>, vector<1x2x128xf32>
    %64 = vector.shape_cast %63 : vector<1x2x128xf32> to vector<2x128xf32>
    %65 = vector.shape_cast %62 : vector<2x128xf32> to vector<1x2x128xf32>
    tpu.vector_store %arg7[%c7, %c0_41, %c0_42], %65 {strides = array<i32>} : memref<8x2x128xf32, #tpu.memory_space<vmem>>, vector<1x2x128xf32>,
    %66 = vector.extract_strided_slice %5 {offsets = [14, 128], sizes = [2, 128], strides = [1, 1]} : vector<16x256xf32> to vector<2x128xf32>
    %c7_43 = arith.constant 7 : index
    %c0_44 = arith.constant 0 : index
    %c0_45 = arith.constant 0 : index
    %67 = vector.load %arg8[%c7_43, %c0_44, %c0_45] : memref<8x2x128xf32, #tpu.memory_space<vmem>>, vector<1x2x128xf32>
    %68 = vector.shape_cast %67 : vector<1x2x128xf32> to vector<2x128xf32>
    %69 = vector.shape_cast %66 : vector<2x128xf32> to vector<1x2x128xf32>
    tpu.vector_store %arg8[%c7_43, %c0_44, %c0_45], %69 {strides = array<i32>} : memref<8x2x128xf32, #tpu.memory_space<vmem>>, vector<1x2x128xf32>,
    %c0_46 = arith.constant 0 : index
    %c0_47 = arith.constant 0 : index
    %70 = vector.load %arg2[%c0_46, %c0_47] : memref<64x256xf32, #tpu.memory_space<vmem>>, vector<64x256xf32>
    %cst_48 = arith.constant 0.000000e+00 : f32
    %71 = vector.broadcast %cst_48 : f32 to vector<2x64xf32>
    %cst_49 = arith.constant 0.000000e+00 : f32
    %72 = vector.broadcast %cst_49 : f32 to vector<2x64xf32>
    %c0_i32 = arith.constant 0 : i32
    %c7_i32 = arith.constant 7 : i32
    %73 = arith.subi %c7_i32, %c0_i32 : i32
    %74 = arith.index_cast %c0_i32 : i32 to index
    %c0_50 = arith.constant 0 : index
    %c0_51 = arith.constant 0 : index
    %75 = vector.load %arg7[%74, %c0_50, %c0_51] : memref<8x2x128xf32, #tpu.memory_space<vmem>>, vector<1x2x128xf32>
    %76 = vector.shape_cast %75 : vector<1x2x128xf32> to vector<2x128xf32>
    %77 = arith.index_cast %73 : i32 to index
    %c0_52 = arith.constant 0 : index
    %c0_53 = arith.constant 0 : index
    %78 = vector.load %arg8[%77, %c0_52, %c0_53] : memref<8x2x128xf32, #tpu.memory_space<vmem>>, vector<1x2x128xf32>
    %79 = vector.shape_cast %78 : vector<1x2x128xf32> to vector<2x128xf32>
    %80 = tpu.concatenate %76, %79 in 1 : vector<2x128xf32>, vector<2x128xf32> -> vector<2x256xf32>
    %cst_54 = arith.constant dense<0.000000e+00> : vector<2x256xf32>
    %81 = tpu.matmul %71, %70, %cst_54 {dimension_numbers = #tpu.dot_dimension_numbers<[1], [0], [0], [1], [0, 0, 1, 1], [], []>} : vector<2x64xf32>, vector<64x256xf32>, vector<2x256xf32> -> vector<2x256xf32>
    %82 = arith.addf %80, %81 : vector<2x256xf32>
    %83 = arith.negf %82 : vector<2x256xf32>
    %84 = math.exp %83 : vector<2x256xf32>
    %cst_55 = arith.constant 1.000000e+00 : f32
    %85 = vector.broadcast %cst_55 : f32 to vector<2x256xf32>
    %86 = arith.addf %85, %84 : vector<2x256xf32>
    %87 = arith.divf %85, %86 : vector<2x256xf32>
    %88 = math.tanh %82 : vector<2x256xf32>
    %89 = vector.extract_strided_slice %87 {offsets = [0, 0], sizes = [2, 32], strides = [1, 1]} : vector<2x256xf32> to vector<2x32xf32>
    %90 = vector.extract_strided_slice %87 {offsets = [0, 128], sizes = [2, 32], strides = [1, 1]} : vector<2x256xf32> to vector<2x32xf32>
    %91 = tpu.concatenate %89, %90 in 1 : vector<2x32xf32>, vector<2x32xf32> -> vector<2x64xf32>
    %92 = vector.extract_strided_slice %87 {offsets = [0, 32], sizes = [2, 32], strides = [1, 1]} : vector<2x256xf32> to vector<2x32xf32>
    %93 = vector.extract_strided_slice %87 {offsets = [0, 160], sizes = [2, 32], strides = [1, 1]} : vector<2x256xf32> to vector<2x32xf32>
    %94 = tpu.concatenate %92, %93 in 1 : vector<2x32xf32>, vector<2x32xf32> -> vector<2x64xf32>
    %95 = vector.extract_strided_slice %88 {offsets = [0, 64], sizes = [2, 32], strides = [1, 1]} : vector<2x256xf32> to vector<2x32xf32>
    %96 = vector.extract_strided_slice %88 {offsets = [0, 192], sizes = [2, 32], strides = [1, 1]} : vector<2x256xf32> to vector<2x32xf32>
    %97 = tpu.concatenate %95, %96 in 1 : vector<2x32xf32>, vector<2x32xf32> -> vector<2x64xf32>
    %98 = vector.extract_strided_slice %87 {offsets = [0, 96], sizes = [2, 32], strides = [1, 1]} : vector<2x256xf32> to vector<2x32xf32>
    %99 = vector.extract_strided_slice %87 {offsets = [0, 224], sizes = [2, 32], strides = [1, 1]} : vector<2x256xf32> to vector<2x32xf32>
    %100 = tpu.concatenate %98, %99 in 1 : vector<2x32xf32>, vector<2x32xf32> -> vector<2x64xf32>
    %101 = arith.mulf %94, %72 : vector<2x64xf32>
    %102 = arith.mulf %91, %97 : vector<2x64xf32>
    %103 = arith.addf %101, %102 : vector<2x64xf32>
    %104 = math.tanh %103 : vector<2x64xf32>
    %105 = arith.mulf %100, %104 : vector<2x64xf32>
    %106 = vector.extract_strided_slice %105 {offsets = [0, 0], sizes = [2, 32], strides = [1, 1]} : vector<2x64xf32> to vector<2x32xf32>
    %107 = arith.index_cast %c0_i32 : i32 to index
    %c0_56 = arith.constant 0 : index
    %c0_57 = arith.constant 0 : index
    %108 = vector.load %arg9[%107, %c0_56, %c0_57] : memref<8x2x32xf32, #tpu.memory_space<vmem>>, vector<1x2x32xf32>
    %109 = vector.shape_cast %108 : vector<1x2x32xf32> to vector<2x32xf32>
    %110 = vector.shape_cast %106 : vector<2x32xf32> to vector<1x2x32xf32>
    tpu.vector_store %arg9[%107, %c0_56, %c0_57], %110 {strides = array<i32>} : memref<8x2x32xf32, #tpu.memory_space<vmem>>, vector<1x2x32xf32>,
    %111 = vector.extract_strided_slice %105 {offsets = [0, 32], sizes = [2, 32], strides = [1, 1]} : vector<2x64xf32> to vector<2x32xf32>
    %112 = arith.index_cast %73 : i32 to index
    %c0_58 = arith.constant 0 : index
    %c0_59 = arith.constant 0 : index
    %113 = vector.load %arg10[%112, %c0_58, %c0_59] : memref<8x2x32xf32, #tpu.memory_space<vmem>>, vector<1x2x32xf32>
    %114 = vector.shape_cast %113 : vector<1x2x32xf32> to vector<2x32xf32>
    %115 = vector.shape_cast %111 : vector<2x32xf32> to vector<1x2x32xf32>
    tpu.vector_store %arg10[%112, %c0_58, %c0_59], %115 {strides = array<i32>} : memref<8x2x32xf32, #tpu.memory_space<vmem>>, vector<1x2x32xf32>,
    %c1_i32 = arith.constant 1 : i32
    %c7_i32_60 = arith.constant 7 : i32
    %116 = arith.subi %c7_i32_60, %c1_i32 : i32
    %117 = arith.index_cast %c1_i32 : i32 to index
    %c0_61 = arith.constant 0 : index
    %c0_62 = arith.constant 0 : index
    %118 = vector.load %arg7[%117, %c0_61, %c0_62] : memref<8x2x128xf32, #tpu.memory_space<vmem>>, vector<1x2x128xf32>
    %119 = vector.shape_cast %118 : vector<1x2x128xf32> to vector<2x128xf32>
    %120 = arith.index_cast %116 : i32 to index
    %c0_63 = arith.constant 0 : index
    %c0_64 = arith.constant 0 : index
    %121 = vector.load %arg8[%120, %c0_63, %c0_64] : memref<8x2x128xf32, #tpu.memory_space<vmem>>, vector<1x2x128xf32>
    %122 = vector.shape_cast %121 : vector<1x2x128xf32> to vector<2x128xf32>
    %123 = tpu.concatenate %119, %122 in 1 : vector<2x128xf32>, vector<2x128xf32> -> vector<2x256xf32>
    %cst_65 = arith.constant dense<0.000000e+00> : vector<2x256xf32>
    %124 = tpu.matmul %105, %70, %cst_65 {dimension_numbers = #tpu.dot_dimension_numbers<[1], [0], [0], [1], [0, 0, 1, 1], [], []>} : vector<2x64xf32>, vector<64x256xf32>, vector<2x256xf32> -> vector<2x256xf32>
    %125 = arith.addf %123, %124 : vector<2x256xf32>
    %126 = arith.negf %125 : vector<2x256xf32>
    %127 = math.exp %126 : vector<2x256xf32>
    %cst_66 = arith.constant 1.000000e+00 : f32
    %128 = vector.broadcast %cst_66 : f32 to vector<2x256xf32>
    %129 = arith.addf %128, %127 : vector<2x256xf32>
    %130 = arith.divf %128, %129 : vector<2x256xf32>
    %131 = math.tanh %125 : vector<2x256xf32>
    %132 = vector.extract_strided_slice %130 {offsets = [0, 0], sizes = [2, 32], strides = [1, 1]} : vector<2x256xf32> to vector<2x32xf32>
    %133 = vector.extract_strided_slice %130 {offsets = [0, 128], sizes = [2, 32], strides = [1, 1]} : vector<2x256xf32> to vector<2x32xf32>
    %134 = tpu.concatenate %132, %133 in 1 : vector<2x32xf32>, vector<2x32xf32> -> vector<2x64xf32>
    %135 = vector.extract_strided_slice %130 {offsets = [0, 32], sizes = [2, 32], strides = [1, 1]} : vector<2x256xf32> to vector<2x32xf32>
    %136 = vector.extract_strided_slice %130 {offsets = [0, 160], sizes = [2, 32], strides = [1, 1]} : vector<2x256xf32> to vector<2x32xf32>
    %137 = tpu.concatenate %135, %136 in 1 : vector<2x32xf32>, vector<2x32xf32> -> vector<2x64xf32>
    %138 = vector.extract_strided_slice %131 {offsets = [0, 64], sizes = [2, 32], strides = [1, 1]} : vector<2x256xf32> to vector<2x32xf32>
    %139 = vector.extract_strided_slice %131 {offsets = [0, 192], sizes = [2, 32], strides = [1, 1]} : vector<2x256xf32> to vector<2x32xf32>
    %140 = tpu.concatenate %138, %139 in 1 : vector<2x32xf32>, vector<2x32xf32> -> vector<2x64xf32>
    %141 = vector.extract_strided_slice %130 {offsets = [0, 96], sizes = [2, 32], strides = [1, 1]} : vector<2x256xf32> to vector<2x32xf32>
    %142 = vector.extract_strided_slice %130 {offsets = [0, 224], sizes = [2, 32], strides = [1, 1]} : vector<2x256xf32> to vector<2x32xf32>
    %143 = tpu.concatenate %141, %142 in 1 : vector<2x32xf32>, vector<2x32xf32> -> vector<2x64xf32>
    %144 = arith.mulf %137, %103 : vector<2x64xf32>
    %145 = arith.mulf %134, %140 : vector<2x64xf32>
    %146 = arith.addf %144, %145 : vector<2x64xf32>
    %147 = math.tanh %146 : vector<2x64xf32>
    %148 = arith.mulf %143, %147 : vector<2x64xf32>
    %149 = vector.extract_strided_slice %148 {offsets = [0, 0], sizes = [2, 32], strides = [1, 1]} : vector<2x64xf32> to vector<2x32xf32>
    %150 = arith.index_cast %c1_i32 : i32 to index
    %c0_67 = arith.constant 0 : index
    %c0_68 = arith.constant 0 : index
    %151 = vector.load %arg9[%150, %c0_67, %c0_68] : memref<8x2x32xf32, #tpu.memory_space<vmem>>, vector<1x2x32xf32>
    %152 = vector.shape_cast %151 : vector<1x2x32xf32> to vector<2x32xf32>
    %153 = vector.shape_cast %149 : vector<2x32xf32> to vector<1x2x32xf32>
    tpu.vector_store %arg9[%150, %c0_67, %c0_68], %153 {strides = array<i32>} : memref<8x2x32xf32, #tpu.memory_space<vmem>>, vector<1x2x32xf32>,
    %154 = vector.extract_strided_slice %148 {offsets = [0, 32], sizes = [2, 32], strides = [1, 1]} : vector<2x64xf32> to vector<2x32xf32>
    %155 = arith.index_cast %116 : i32 to index
    %c0_69 = arith.constant 0 : index
    %c0_70 = arith.constant 0 : index
    %156 = vector.load %arg10[%155, %c0_69, %c0_70] : memref<8x2x32xf32, #tpu.memory_space<vmem>>, vector<1x2x32xf32>
    %157 = vector.shape_cast %156 : vector<1x2x32xf32> to vector<2x32xf32>
    %158 = vector.shape_cast %154 : vector<2x32xf32> to vector<1x2x32xf32>
    tpu.vector_store %arg10[%155, %c0_69, %c0_70], %158 {strides = array<i32>} : memref<8x2x32xf32, #tpu.memory_space<vmem>>, vector<1x2x32xf32>,
    %c2_i32 = arith.constant 2 : i32
    %c7_i32_71 = arith.constant 7 : i32
    %159 = arith.subi %c7_i32_71, %c2_i32 : i32
    %160 = arith.index_cast %c2_i32 : i32 to index
    %c0_72 = arith.constant 0 : index
    %c0_73 = arith.constant 0 : index
    %161 = vector.load %arg7[%160, %c0_72, %c0_73] : memref<8x2x128xf32, #tpu.memory_space<vmem>>, vector<1x2x128xf32>
    %162 = vector.shape_cast %161 : vector<1x2x128xf32> to vector<2x128xf32>
    %163 = arith.index_cast %159 : i32 to index
    %c0_74 = arith.constant 0 : index
    %c0_75 = arith.constant 0 : index
    %164 = vector.load %arg8[%163, %c0_74, %c0_75] : memref<8x2x128xf32, #tpu.memory_space<vmem>>, vector<1x2x128xf32>
    %165 = vector.shape_cast %164 : vector<1x2x128xf32> to vector<2x128xf32>
    %166 = tpu.concatenate %162, %165 in 1 : vector<2x128xf32>, vector<2x128xf32> -> vector<2x256xf32>
    %cst_76 = arith.constant dense<0.000000e+00> : vector<2x256xf32>
    %167 = tpu.matmul %148, %70, %cst_76 {dimension_numbers = #tpu.dot_dimension_numbers<[1], [0], [0], [1], [0, 0, 1, 1], [], []>} : vector<2x64xf32>, vector<64x256xf32>, vector<2x256xf32> -> vector<2x256xf32>
    %168 = arith.addf %166, %167 : vector<2x256xf32>
    %169 = arith.negf %168 : vector<2x256xf32>
    %170 = math.exp %169 : vector<2x256xf32>
    %cst_77 = arith.constant 1.000000e+00 : f32
    %171 = vector.broadcast %cst_77 : f32 to vector<2x256xf32>
    %172 = arith.addf %171, %170 : vector<2x256xf32>
    %173 = arith.divf %171, %172 : vector<2x256xf32>
    %174 = math.tanh %168 : vector<2x256xf32>
    %175 = vector.extract_strided_slice %173 {offsets = [0, 0], sizes = [2, 32], strides = [1, 1]} : vector<2x256xf32> to vector<2x32xf32>
    %176 = vector.extract_strided_slice %173 {offsets = [0, 128], sizes = [2, 32], strides = [1, 1]} : vector<2x256xf32> to vector<2x32xf32>
    %177 = tpu.concatenate %175, %176 in 1 : vector<2x32xf32>, vector<2x32xf32> -> vector<2x64xf32>
    %178 = vector.extract_strided_slice %173 {offsets = [0, 32], sizes = [2, 32], strides = [1, 1]} : vector<2x256xf32> to vector<2x32xf32>
    %179 = vector.extract_strided_slice %173 {offsets = [0, 160], sizes = [2, 32], strides = [1, 1]} : vector<2x256xf32> to vector<2x32xf32>
    %180 = tpu.concatenate %178, %179 in 1 : vector<2x32xf32>, vector<2x32xf32> -> vector<2x64xf32>
    %181 = vector.extract_strided_slice %174 {offsets = [0, 64], sizes = [2, 32], strides = [1, 1]} : vector<2x256xf32> to vector<2x32xf32>
    %182 = vector.extract_strided_slice %174 {offsets = [0, 192], sizes = [2, 32], strides = [1, 1]} : vector<2x256xf32> to vector<2x32xf32>
    %183 = tpu.concatenate %181, %182 in 1 : vector<2x32xf32>, vector<2x32xf32> -> vector<2x64xf32>
    %184 = vector.extract_strided_slice %173 {offsets = [0, 96], sizes = [2, 32], strides = [1, 1]} : vector<2x256xf32> to vector<2x32xf32>
    %185 = vector.extract_strided_slice %173 {offsets = [0, 224], sizes = [2, 32], strides = [1, 1]} : vector<2x256xf32> to vector<2x32xf32>
    %186 = tpu.concatenate %184, %185 in 1 : vector<2x32xf32>, vector<2x32xf32> -> vector<2x64xf32>
    %187 = arith.mulf %180, %146 : vector<2x64xf32>
    %188 = arith.mulf %177, %183 : vector<2x64xf32>
    %189 = arith.addf %187, %188 : vector<2x64xf32>
    %190 = math.tanh %189 : vector<2x64xf32>
    %191 = arith.mulf %186, %190 : vector<2x64xf32>
    %192 = vector.extract_strided_slice %191 {offsets = [0, 0], sizes = [2, 32], strides = [1, 1]} : vector<2x64xf32> to vector<2x32xf32>
    %193 = arith.index_cast %c2_i32 : i32 to index
    %c0_78 = arith.constant 0 : index
    %c0_79 = arith.constant 0 : index
    %194 = vector.load %arg9[%193, %c0_78, %c0_79] : memref<8x2x32xf32, #tpu.memory_space<vmem>>, vector<1x2x32xf32>
    %195 = vector.shape_cast %194 : vector<1x2x32xf32> to vector<2x32xf32>
    %196 = vector.shape_cast %192 : vector<2x32xf32> to vector<1x2x32xf32>
    tpu.vector_store %arg9[%193, %c0_78, %c0_79], %196 {strides = array<i32>} : memref<8x2x32xf32, #tpu.memory_space<vmem>>, vector<1x2x32xf32>,
    %197 = vector.extract_strided_slice %191 {offsets = [0, 32], sizes = [2, 32], strides = [1, 1]} : vector<2x64xf32> to vector<2x32xf32>
    %198 = arith.index_cast %159 : i32 to index
    %c0_80 = arith.constant 0 : index
    %c0_81 = arith.constant 0 : index
    %199 = vector.load %arg10[%198, %c0_80, %c0_81] : memref<8x2x32xf32, #tpu.memory_space<vmem>>, vector<1x2x32xf32>
    %200 = vector.shape_cast %199 : vector<1x2x32xf32> to vector<2x32xf32>
    %201 = vector.shape_cast %197 : vector<2x32xf32> to vector<1x2x32xf32>
    tpu.vector_store %arg10[%198, %c0_80, %c0_81], %201 {strides = array<i32>} : memref<8x2x32xf32, #tpu.memory_space<vmem>>, vector<1x2x32xf32>,
    %c3_i32 = arith.constant 3 : i32
    %c7_i32_82 = arith.constant 7 : i32
    %202 = arith.subi %c7_i32_82, %c3_i32 : i32
    %203 = arith.index_cast %c3_i32 : i32 to index
    %c0_83 = arith.constant 0 : index
    %c0_84 = arith.constant 0 : index
    %204 = vector.load %arg7[%203, %c0_83, %c0_84] : memref<8x2x128xf32, #tpu.memory_space<vmem>>, vector<1x2x128xf32>
    %205 = vector.shape_cast %204 : vector<1x2x128xf32> to vector<2x128xf32>
    %206 = arith.index_cast %202 : i32 to index
    %c0_85 = arith.constant 0 : index
    %c0_86 = arith.constant 0 : index
    %207 = vector.load %arg8[%206, %c0_85, %c0_86] : memref<8x2x128xf32, #tpu.memory_space<vmem>>, vector<1x2x128xf32>
    %208 = vector.shape_cast %207 : vector<1x2x128xf32> to vector<2x128xf32>
    %209 = tpu.concatenate %205, %208 in 1 : vector<2x128xf32>, vector<2x128xf32> -> vector<2x256xf32>
    %cst_87 = arith.constant dense<0.000000e+00> : vector<2x256xf32>
    %210 = tpu.matmul %191, %70, %cst_87 {dimension_numbers = #tpu.dot_dimension_numbers<[1], [0], [0], [1], [0, 0, 1, 1], [], []>} : vector<2x64xf32>, vector<64x256xf32>, vector<2x256xf32> -> vector<2x256xf32>
    %211 = arith.addf %209, %210 : vector<2x256xf32>
    %212 = arith.negf %211 : vector<2x256xf32>
    %213 = math.exp %212 : vector<2x256xf32>
    %cst_88 = arith.constant 1.000000e+00 : f32
    %214 = vector.broadcast %cst_88 : f32 to vector<2x256xf32>
    %215 = arith.addf %214, %213 : vector<2x256xf32>
    %216 = arith.divf %214, %215 : vector<2x256xf32>
    %217 = math.tanh %211 : vector<2x256xf32>
    %218 = vector.extract_strided_slice %216 {offsets = [0, 0], sizes = [2, 32], strides = [1, 1]} : vector<2x256xf32> to vector<2x32xf32>
    %219 = vector.extract_strided_slice %216 {offsets = [0, 128], sizes = [2, 32], strides = [1, 1]} : vector<2x256xf32> to vector<2x32xf32>
    %220 = tpu.concatenate %218, %219 in 1 : vector<2x32xf32>, vector<2x32xf32> -> vector<2x64xf32>
    %221 = vector.extract_strided_slice %216 {offsets = [0, 32], sizes = [2, 32], strides = [1, 1]} : vector<2x256xf32> to vector<2x32xf32>
    %222 = vector.extract_strided_slice %216 {offsets = [0, 160], sizes = [2, 32], strides = [1, 1]} : vector<2x256xf32> to vector<2x32xf32>
    %223 = tpu.concatenate %221, %222 in 1 : vector<2x32xf32>, vector<2x32xf32> -> vector<2x64xf32>
    %224 = vector.extract_strided_slice %217 {offsets = [0, 64], sizes = [2, 32], strides = [1, 1]} : vector<2x256xf32> to vector<2x32xf32>
    %225 = vector.extract_strided_slice %217 {offsets = [0, 192], sizes = [2, 32], strides = [1, 1]} : vector<2x256xf32> to vector<2x32xf32>
    %226 = tpu.concatenate %224, %225 in 1 : vector<2x32xf32>, vector<2x32xf32> -> vector<2x64xf32>
    %227 = vector.extract_strided_slice %216 {offsets = [0, 96], sizes = [2, 32], strides = [1, 1]} : vector<2x256xf32> to vector<2x32xf32>
    %228 = vector.extract_strided_slice %216 {offsets = [0, 224], sizes = [2, 32], strides = [1, 1]} : vector<2x256xf32> to vector<2x32xf32>
    %229 = tpu.concatenate %227, %228 in 1 : vector<2x32xf32>, vector<2x32xf32> -> vector<2x64xf32>
    %230 = arith.mulf %223, %189 : vector<2x64xf32>
    %231 = arith.mulf %220, %226 : vector<2x64xf32>
    %232 = arith.addf %230, %231 : vector<2x64xf32>
    %233 = math.tanh %232 : vector<2x64xf32>
    %234 = arith.mulf %229, %233 : vector<2x64xf32>
    %235 = vector.extract_strided_slice %234 {offsets = [0, 0], sizes = [2, 32], strides = [1, 1]} : vector<2x64xf32> to vector<2x32xf32>
    %236 = arith.index_cast %c3_i32 : i32 to index
    %c0_89 = arith.constant 0 : index
    %c0_90 = arith.constant 0 : index
    %237 = vector.load %arg9[%236, %c0_89, %c0_90] : memref<8x2x32xf32, #tpu.memory_space<vmem>>, vector<1x2x32xf32>
    %238 = vector.shape_cast %237 : vector<1x2x32xf32> to vector<2x32xf32>
    %239 = vector.shape_cast %235 : vector<2x32xf32> to vector<1x2x32xf32>
    tpu.vector_store %arg9[%236, %c0_89, %c0_90], %239 {strides = array<i32>} : memref<8x2x32xf32, #tpu.memory_space<vmem>>, vector<1x2x32xf32>,
    %240 = vector.extract_strided_slice %234 {offsets = [0, 32], sizes = [2, 32], strides = [1, 1]} : vector<2x64xf32> to vector<2x32xf32>
    %241 = arith.index_cast %202 : i32 to index
    %c0_91 = arith.constant 0 : index
    %c0_92 = arith.constant 0 : index
    %242 = vector.load %arg10[%241, %c0_91, %c0_92] : memref<8x2x32xf32, #tpu.memory_space<vmem>>, vector<1x2x32xf32>
    %243 = vector.shape_cast %242 : vector<1x2x32xf32> to vector<2x32xf32>
    %244 = vector.shape_cast %240 : vector<2x32xf32> to vector<1x2x32xf32>
    tpu.vector_store %arg10[%241, %c0_91, %c0_92], %244 {strides = array<i32>} : memref<8x2x32xf32, #tpu.memory_space<vmem>>, vector<1x2x32xf32>,
    %c4_i32 = arith.constant 4 : i32
    %c7_i32_93 = arith.constant 7 : i32
    %245 = arith.subi %c7_i32_93, %c4_i32 : i32
    %246 = arith.index_cast %c4_i32 : i32 to index
    %c0_94 = arith.constant 0 : index
    %c0_95 = arith.constant 0 : index
    %247 = vector.load %arg7[%246, %c0_94, %c0_95] : memref<8x2x128xf32, #tpu.memory_space<vmem>>, vector<1x2x128xf32>
    %248 = vector.shape_cast %247 : vector<1x2x128xf32> to vector<2x128xf32>
    %249 = arith.index_cast %245 : i32 to index
    %c0_96 = arith.constant 0 : index
    %c0_97 = arith.constant 0 : index
    %250 = vector.load %arg8[%249, %c0_96, %c0_97] : memref<8x2x128xf32, #tpu.memory_space<vmem>>, vector<1x2x128xf32>
    %251 = vector.shape_cast %250 : vector<1x2x128xf32> to vector<2x128xf32>
    %252 = tpu.concatenate %248, %251 in 1 : vector<2x128xf32>, vector<2x128xf32> -> vector<2x256xf32>
    %cst_98 = arith.constant dense<0.000000e+00> : vector<2x256xf32>
    %253 = tpu.matmul %234, %70, %cst_98 {dimension_numbers = #tpu.dot_dimension_numbers<[1], [0], [0], [1], [0, 0, 1, 1], [], []>} : vector<2x64xf32>, vector<64x256xf32>, vector<2x256xf32> -> vector<2x256xf32>
    %254 = arith.addf %252, %253 : vector<2x256xf32>
    %255 = arith.negf %254 : vector<2x256xf32>
    %256 = math.exp %255 : vector<2x256xf32>
    %cst_99 = arith.constant 1.000000e+00 : f32
    %257 = vector.broadcast %cst_99 : f32 to vector<2x256xf32>
    %258 = arith.addf %257, %256 : vector<2x256xf32>
    %259 = arith.divf %257, %258 : vector<2x256xf32>
    %260 = math.tanh %254 : vector<2x256xf32>
    %261 = vector.extract_strided_slice %259 {offsets = [0, 0], sizes = [2, 32], strides = [1, 1]} : vector<2x256xf32> to vector<2x32xf32>
    %262 = vector.extract_strided_slice %259 {offsets = [0, 128], sizes = [2, 32], strides = [1, 1]} : vector<2x256xf32> to vector<2x32xf32>
    %263 = tpu.concatenate %261, %262 in 1 : vector<2x32xf32>, vector<2x32xf32> -> vector<2x64xf32>
    %264 = vector.extract_strided_slice %259 {offsets = [0, 32], sizes = [2, 32], strides = [1, 1]} : vector<2x256xf32> to vector<2x32xf32>
    %265 = vector.extract_strided_slice %259 {offsets = [0, 160], sizes = [2, 32], strides = [1, 1]} : vector<2x256xf32> to vector<2x32xf32>
    %266 = tpu.concatenate %264, %265 in 1 : vector<2x32xf32>, vector<2x32xf32> -> vector<2x64xf32>
    %267 = vector.extract_strided_slice %260 {offsets = [0, 64], sizes = [2, 32], strides = [1, 1]} : vector<2x256xf32> to vector<2x32xf32>
    %268 = vector.extract_strided_slice %260 {offsets = [0, 192], sizes = [2, 32], strides = [1, 1]} : vector<2x256xf32> to vector<2x32xf32>
    %269 = tpu.concatenate %267, %268 in 1 : vector<2x32xf32>, vector<2x32xf32> -> vector<2x64xf32>
    %270 = vector.extract_strided_slice %259 {offsets = [0, 96], sizes = [2, 32], strides = [1, 1]} : vector<2x256xf32> to vector<2x32xf32>
    %271 = vector.extract_strided_slice %259 {offsets = [0, 224], sizes = [2, 32], strides = [1, 1]} : vector<2x256xf32> to vector<2x32xf32>
    %272 = tpu.concatenate %270, %271 in 1 : vector<2x32xf32>, vector<2x32xf32> -> vector<2x64xf32>
    %273 = arith.mulf %266, %232 : vector<2x64xf32>
    %274 = arith.mulf %263, %269 : vector<2x64xf32>
    %275 = arith.addf %273, %274 : vector<2x64xf32>
    %276 = math.tanh %275 : vector<2x64xf32>
    %277 = arith.mulf %272, %276 : vector<2x64xf32>
    %278 = vector.extract_strided_slice %277 {offsets = [0, 0], sizes = [2, 32], strides = [1, 1]} : vector<2x64xf32> to vector<2x32xf32>
    %279 = arith.index_cast %c4_i32 : i32 to index
    %c0_100 = arith.constant 0 : index
    %c0_101 = arith.constant 0 : index
    %280 = vector.load %arg9[%279, %c0_100, %c0_101] : memref<8x2x32xf32, #tpu.memory_space<vmem>>, vector<1x2x32xf32>
    %281 = vector.shape_cast %280 : vector<1x2x32xf32> to vector<2x32xf32>
    %282 = vector.shape_cast %278 : vector<2x32xf32> to vector<1x2x32xf32>
    tpu.vector_store %arg9[%279, %c0_100, %c0_101], %282 {strides = array<i32>} : memref<8x2x32xf32, #tpu.memory_space<vmem>>, vector<1x2x32xf32>,
    %283 = vector.extract_strided_slice %277 {offsets = [0, 32], sizes = [2, 32], strides = [1, 1]} : vector<2x64xf32> to vector<2x32xf32>
    %284 = arith.index_cast %245 : i32 to index
    %c0_102 = arith.constant 0 : index
    %c0_103 = arith.constant 0 : index
    %285 = vector.load %arg10[%284, %c0_102, %c0_103] : memref<8x2x32xf32, #tpu.memory_space<vmem>>, vector<1x2x32xf32>
    %286 = vector.shape_cast %285 : vector<1x2x32xf32> to vector<2x32xf32>
    %287 = vector.shape_cast %283 : vector<2x32xf32> to vector<1x2x32xf32>
    tpu.vector_store %arg10[%284, %c0_102, %c0_103], %287 {strides = array<i32>} : memref<8x2x32xf32, #tpu.memory_space<vmem>>, vector<1x2x32xf32>,
    %c5_i32 = arith.constant 5 : i32
    %c7_i32_104 = arith.constant 7 : i32
    %288 = arith.subi %c7_i32_104, %c5_i32 : i32
    %289 = arith.index_cast %c5_i32 : i32 to index
    %c0_105 = arith.constant 0 : index
    %c0_106 = arith.constant 0 : index
    %290 = vector.load %arg7[%289, %c0_105, %c0_106] : memref<8x2x128xf32, #tpu.memory_space<vmem>>, vector<1x2x128xf32>
    %291 = vector.shape_cast %290 : vector<1x2x128xf32> to vector<2x128xf32>
    %292 = arith.index_cast %288 : i32 to index
    %c0_107 = arith.constant 0 : index
    %c0_108 = arith.constant 0 : index
    %293 = vector.load %arg8[%292, %c0_107, %c0_108] : memref<8x2x128xf32, #tpu.memory_space<vmem>>, vector<1x2x128xf32>
    %294 = vector.shape_cast %293 : vector<1x2x128xf32> to vector<2x128xf32>
    %295 = tpu.concatenate %291, %294 in 1 : vector<2x128xf32>, vector<2x128xf32> -> vector<2x256xf32>
    %cst_109 = arith.constant dense<0.000000e+00> : vector<2x256xf32>
    %296 = tpu.matmul %277, %70, %cst_109 {dimension_numbers = #tpu.dot_dimension_numbers<[1], [0], [0], [1], [0, 0, 1, 1], [], []>} : vector<2x64xf32>, vector<64x256xf32>, vector<2x256xf32> -> vector<2x256xf32>
    %297 = arith.addf %295, %296 : vector<2x256xf32>
    %298 = arith.negf %297 : vector<2x256xf32>
    %299 = math.exp %298 : vector<2x256xf32>
    %cst_110 = arith.constant 1.000000e+00 : f32
    %300 = vector.broadcast %cst_110 : f32 to vector<2x256xf32>
    %301 = arith.addf %300, %299 : vector<2x256xf32>
    %302 = arith.divf %300, %301 : vector<2x256xf32>
    %303 = math.tanh %297 : vector<2x256xf32>
    %304 = vector.extract_strided_slice %302 {offsets = [0, 0], sizes = [2, 32], strides = [1, 1]} : vector<2x256xf32> to vector<2x32xf32>
    %305 = vector.extract_strided_slice %302 {offsets = [0, 128], sizes = [2, 32], strides = [1, 1]} : vector<2x256xf32> to vector<2x32xf32>
    %306 = tpu.concatenate %304, %305 in 1 : vector<2x32xf32>, vector<2x32xf32> -> vector<2x64xf32>
    %307 = vector.extract_strided_slice %302 {offsets = [0, 32], sizes = [2, 32], strides = [1, 1]} : vector<2x256xf32> to vector<2x32xf32>
    %308 = vector.extract_strided_slice %302 {offsets = [0, 160], sizes = [2, 32], strides = [1, 1]} : vector<2x256xf32> to vector<2x32xf32>
    %309 = tpu.concatenate %307, %308 in 1 : vector<2x32xf32>, vector<2x32xf32> -> vector<2x64xf32>
    %310 = vector.extract_strided_slice %303 {offsets = [0, 64], sizes = [2, 32], strides = [1, 1]} : vector<2x256xf32> to vector<2x32xf32>
    %311 = vector.extract_strided_slice %303 {offsets = [0, 192], sizes = [2, 32], strides = [1, 1]} : vector<2x256xf32> to vector<2x32xf32>
    %312 = tpu.concatenate %310, %311 in 1 : vector<2x32xf32>, vector<2x32xf32> -> vector<2x64xf32>
    %313 = vector.extract_strided_slice %302 {offsets = [0, 96], sizes = [2, 32], strides = [1, 1]} : vector<2x256xf32> to vector<2x32xf32>
    %314 = vector.extract_strided_slice %302 {offsets = [0, 224], sizes = [2, 32], strides = [1, 1]} : vector<2x256xf32> to vector<2x32xf32>
    %315 = tpu.concatenate %313, %314 in 1 : vector<2x32xf32>, vector<2x32xf32> -> vector<2x64xf32>
    %316 = arith.mulf %309, %275 : vector<2x64xf32>
    %317 = arith.mulf %306, %312 : vector<2x64xf32>
    %318 = arith.addf %316, %317 : vector<2x64xf32>
    %319 = math.tanh %318 : vector<2x64xf32>
    %320 = arith.mulf %315, %319 : vector<2x64xf32>
    %321 = vector.extract_strided_slice %320 {offsets = [0, 0], sizes = [2, 32], strides = [1, 1]} : vector<2x64xf32> to vector<2x32xf32>
    %322 = arith.index_cast %c5_i32 : i32 to index
    %c0_111 = arith.constant 0 : index
    %c0_112 = arith.constant 0 : index
    %323 = vector.load %arg9[%322, %c0_111, %c0_112] : memref<8x2x32xf32, #tpu.memory_space<vmem>>, vector<1x2x32xf32>
    %324 = vector.shape_cast %323 : vector<1x2x32xf32> to vector<2x32xf32>
    %325 = vector.shape_cast %321 : vector<2x32xf32> to vector<1x2x32xf32>
    tpu.vector_store %arg9[%322, %c0_111, %c0_112], %325 {strides = array<i32>} : memref<8x2x32xf32, #tpu.memory_space<vmem>>, vector<1x2x32xf32>,
    %326 = vector.extract_strided_slice %320 {offsets = [0, 32], sizes = [2, 32], strides = [1, 1]} : vector<2x64xf32> to vector<2x32xf32>
    %327 = arith.index_cast %288 : i32 to index
    %c0_113 = arith.constant 0 : index
    %c0_114 = arith.constant 0 : index
    %328 = vector.load %arg10[%327, %c0_113, %c0_114] : memref<8x2x32xf32, #tpu.memory_space<vmem>>, vector<1x2x32xf32>
    %329 = vector.shape_cast %328 : vector<1x2x32xf32> to vector<2x32xf32>
    %330 = vector.shape_cast %326 : vector<2x32xf32> to vector<1x2x32xf32>
    tpu.vector_store %arg10[%327, %c0_113, %c0_114], %330 {strides = array<i32>} : memref<8x2x32xf32, #tpu.memory_space<vmem>>, vector<1x2x32xf32>,
    %c6_i32 = arith.constant 6 : i32
    %c7_i32_115 = arith.constant 7 : i32
    %331 = arith.subi %c7_i32_115, %c6_i32 : i32
    %332 = arith.index_cast %c6_i32 : i32 to index
    %c0_116 = arith.constant 0 : index
    %c0_117 = arith.constant 0 : index
    %333 = vector.load %arg7[%332, %c0_116, %c0_117] : memref<8x2x128xf32, #tpu.memory_space<vmem>>, vector<1x2x128xf32>
    %334 = vector.shape_cast %333 : vector<1x2x128xf32> to vector<2x128xf32>
    %335 = arith.index_cast %331 : i32 to index
    %c0_118 = arith.constant 0 : index
    %c0_119 = arith.constant 0 : index
    %336 = vector.load %arg8[%335, %c0_118, %c0_119] : memref<8x2x128xf32, #tpu.memory_space<vmem>>, vector<1x2x128xf32>
    %337 = vector.shape_cast %336 : vector<1x2x128xf32> to vector<2x128xf32>
    %338 = tpu.concatenate %334, %337 in 1 : vector<2x128xf32>, vector<2x128xf32> -> vector<2x256xf32>
    %cst_120 = arith.constant dense<0.000000e+00> : vector<2x256xf32>
    %339 = tpu.matmul %320, %70, %cst_120 {dimension_numbers = #tpu.dot_dimension_numbers<[1], [0], [0], [1], [0, 0, 1, 1], [], []>} : vector<2x64xf32>, vector<64x256xf32>, vector<2x256xf32> -> vector<2x256xf32>
    %340 = arith.addf %338, %339 : vector<2x256xf32>
    %341 = arith.negf %340 : vector<2x256xf32>
    %342 = math.exp %341 : vector<2x256xf32>
    %cst_121 = arith.constant 1.000000e+00 : f32
    %343 = vector.broadcast %cst_121 : f32 to vector<2x256xf32>
    %344 = arith.addf %343, %342 : vector<2x256xf32>
    %345 = arith.divf %343, %344 : vector<2x256xf32>
    %346 = math.tanh %340 : vector<2x256xf32>
    %347 = vector.extract_strided_slice %345 {offsets = [0, 0], sizes = [2, 32], strides = [1, 1]} : vector<2x256xf32> to vector<2x32xf32>
    %348 = vector.extract_strided_slice %345 {offsets = [0, 128], sizes = [2, 32], strides = [1, 1]} : vector<2x256xf32> to vector<2x32xf32>
    %349 = tpu.concatenate %347, %348 in 1 : vector<2x32xf32>, vector<2x32xf32> -> vector<2x64xf32>
    %350 = vector.extract_strided_slice %345 {offsets = [0, 32], sizes = [2, 32], strides = [1, 1]} : vector<2x256xf32> to vector<2x32xf32>
    %351 = vector.extract_strided_slice %345 {offsets = [0, 160], sizes = [2, 32], strides = [1, 1]} : vector<2x256xf32> to vector<2x32xf32>
    %352 = tpu.concatenate %350, %351 in 1 : vector<2x32xf32>, vector<2x32xf32> -> vector<2x64xf32>
    %353 = vector.extract_strided_slice %346 {offsets = [0, 64], sizes = [2, 32], strides = [1, 1]} : vector<2x256xf32> to vector<2x32xf32>
    %354 = vector.extract_strided_slice %346 {offsets = [0, 192], sizes = [2, 32], strides = [1, 1]} : vector<2x256xf32> to vector<2x32xf32>
    %355 = tpu.concatenate %353, %354 in 1 : vector<2x32xf32>, vector<2x32xf32> -> vector<2x64xf32>
    %356 = vector.extract_strided_slice %345 {offsets = [0, 96], sizes = [2, 32], strides = [1, 1]} : vector<2x256xf32> to vector<2x32xf32>
    %357 = vector.extract_strided_slice %345 {offsets = [0, 224], sizes = [2, 32], strides = [1, 1]} : vector<2x256xf32> to vector<2x32xf32>
    %358 = tpu.concatenate %356, %357 in 1 : vector<2x32xf32>, vector<2x32xf32> -> vector<2x64xf32>
    %359 = arith.mulf %352, %318 : vector<2x64xf32>
    %360 = arith.mulf %349, %355 : vector<2x64xf32>
    %361 = arith.addf %359, %360 : vector<2x64xf32>
    %362 = math.tanh %361 : vector<2x64xf32>
    %363 = arith.mulf %358, %362 : vector<2x64xf32>
    %364 = vector.extract_strided_slice %363 {offsets = [0, 0], sizes = [2, 32], strides = [1, 1]} : vector<2x64xf32> to vector<2x32xf32>
    %365 = arith.index_cast %c6_i32 : i32 to index
    %c0_122 = arith.constant 0 : index
    %c0_123 = arith.constant 0 : index
    %366 = vector.load %arg9[%365, %c0_122, %c0_123] : memref<8x2x32xf32, #tpu.memory_space<vmem>>, vector<1x2x32xf32>
    %367 = vector.shape_cast %366 : vector<1x2x32xf32> to vector<2x32xf32>
    %368 = vector.shape_cast %364 : vector<2x32xf32> to vector<1x2x32xf32>
    tpu.vector_store %arg9[%365, %c0_122, %c0_123], %368 {strides = array<i32>} : memref<8x2x32xf32, #tpu.memory_space<vmem>>, vector<1x2x32xf32>,
    %369 = vector.extract_strided_slice %363 {offsets = [0, 32], sizes = [2, 32], strides = [1, 1]} : vector<2x64xf32> to vector<2x32xf32>
    %370 = arith.index_cast %331 : i32 to index
    %c0_124 = arith.constant 0 : index
    %c0_125 = arith.constant 0 : index
    %371 = vector.load %arg10[%370, %c0_124, %c0_125] : memref<8x2x32xf32, #tpu.memory_space<vmem>>, vector<1x2x32xf32>
    %372 = vector.shape_cast %371 : vector<1x2x32xf32> to vector<2x32xf32>
    %373 = vector.shape_cast %369 : vector<2x32xf32> to vector<1x2x32xf32>
    tpu.vector_store %arg10[%370, %c0_124, %c0_125], %373 {strides = array<i32>} : memref<8x2x32xf32, #tpu.memory_space<vmem>>, vector<1x2x32xf32>,
    %c7_i32_126 = arith.constant 7 : i32
    %c7_i32_127 = arith.constant 7 : i32
    %374 = arith.subi %c7_i32_127, %c7_i32_126 : i32
    %375 = arith.index_cast %c7_i32_126 : i32 to index
    %c0_128 = arith.constant 0 : index
    %c0_129 = arith.constant 0 : index
    %376 = vector.load %arg7[%375, %c0_128, %c0_129] : memref<8x2x128xf32, #tpu.memory_space<vmem>>, vector<1x2x128xf32>
    %377 = vector.shape_cast %376 : vector<1x2x128xf32> to vector<2x128xf32>
    %378 = arith.index_cast %374 : i32 to index
    %c0_130 = arith.constant 0 : index
    %c0_131 = arith.constant 0 : index
    %379 = vector.load %arg8[%378, %c0_130, %c0_131] : memref<8x2x128xf32, #tpu.memory_space<vmem>>, vector<1x2x128xf32>
    %380 = vector.shape_cast %379 : vector<1x2x128xf32> to vector<2x128xf32>
    %381 = tpu.concatenate %377, %380 in 1 : vector<2x128xf32>, vector<2x128xf32> -> vector<2x256xf32>
    %cst_132 = arith.constant dense<0.000000e+00> : vector<2x256xf32>
    %382 = tpu.matmul %363, %70, %cst_132 {dimension_numbers = #tpu.dot_dimension_numbers<[1], [0], [0], [1], [0, 0, 1, 1], [], []>} : vector<2x64xf32>, vector<64x256xf32>, vector<2x256xf32> -> vector<2x256xf32>
    %383 = arith.addf %381, %382 : vector<2x256xf32>
    %384 = arith.negf %383 : vector<2x256xf32>
    %385 = math.exp %384 : vector<2x256xf32>
    %cst_133 = arith.constant 1.000000e+00 : f32
    %386 = vector.broadcast %cst_133 : f32 to vector<2x256xf32>
    %387 = arith.addf %386, %385 : vector<2x256xf32>
    %388 = arith.divf %386, %387 : vector<2x256xf32>
    %389 = math.tanh %383 : vector<2x256xf32>
    %390 = vector.extract_strided_slice %388 {offsets = [0, 0], sizes = [2, 32], strides = [1, 1]} : vector<2x256xf32> to vector<2x32xf32>
    %391 = vector.extract_strided_slice %388 {offsets = [0, 128], sizes = [2, 32], strides = [1, 1]} : vector<2x256xf32> to vector<2x32xf32>
    %392 = tpu.concatenate %390, %391 in 1 : vector<2x32xf32>, vector<2x32xf32> -> vector<2x64xf32>
    %393 = vector.extract_strided_slice %388 {offsets = [0, 32], sizes = [2, 32], strides = [1, 1]} : vector<2x256xf32> to vector<2x32xf32>
    %394 = vector.extract_strided_slice %388 {offsets = [0, 160], sizes = [2, 32], strides = [1, 1]} : vector<2x256xf32> to vector<2x32xf32>
    %395 = tpu.concatenate %393, %394 in 1 : vector<2x32xf32>, vector<2x32xf32> -> vector<2x64xf32>
    %396 = vector.extract_strided_slice %389 {offsets = [0, 64], sizes = [2, 32], strides = [1, 1]} : vector<2x256xf32> to vector<2x32xf32>
    %397 = vector.extract_strided_slice %389 {offsets = [0, 192], sizes = [2, 32], strides = [1, 1]} : vector<2x256xf32> to vector<2x32xf32>
    %398 = tpu.concatenate %396, %397 in 1 : vector<2x32xf32>, vector<2x32xf32> -> vector<2x64xf32>
    %399 = vector.extract_strided_slice %388 {offsets = [0, 96], sizes = [2, 32], strides = [1, 1]} : vector<2x256xf32> to vector<2x32xf32>
    %400 = vector.extract_strided_slice %388 {offsets = [0, 224], sizes = [2, 32], strides = [1, 1]} : vector<2x256xf32> to vector<2x32xf32>
    %401 = tpu.concatenate %399, %400 in 1 : vector<2x32xf32>, vector<2x32xf32> -> vector<2x64xf32>
    %402 = arith.mulf %395, %361 : vector<2x64xf32>
    %403 = arith.mulf %392, %398 : vector<2x64xf32>
    %404 = arith.addf %402, %403 : vector<2x64xf32>
    %405 = math.tanh %404 : vector<2x64xf32>
    %406 = arith.mulf %401, %405 : vector<2x64xf32>
    %407 = vector.extract_strided_slice %406 {offsets = [0, 0], sizes = [2, 32], strides = [1, 1]} : vector<2x64xf32> to vector<2x32xf32>
    %408 = arith.index_cast %c7_i32_126 : i32 to index
    %c0_134 = arith.constant 0 : index
    %c0_135 = arith.constant 0 : index
    %409 = vector.load %arg9[%408, %c0_134, %c0_135] : memref<8x2x32xf32, #tpu.memory_space<vmem>>, vector<1x2x32xf32>
    %410 = vector.shape_cast %409 : vector<1x2x32xf32> to vector<2x32xf32>
    %411 = vector.shape_cast %407 : vector<2x32xf32> to vector<1x2x32xf32>
    tpu.vector_store %arg9[%408, %c0_134, %c0_135], %411 {strides = array<i32>} : memref<8x2x32xf32, #tpu.memory_space<vmem>>, vector<1x2x32xf32>,
    %412 = vector.extract_strided_slice %406 {offsets = [0, 32], sizes = [2, 32], strides = [1, 1]} : vector<2x64xf32> to vector<2x32xf32>
    %413 = arith.index_cast %374 : i32 to index
    %c0_136 = arith.constant 0 : index
    %c0_137 = arith.constant 0 : index
    %414 = vector.load %arg10[%413, %c0_136, %c0_137] : memref<8x2x32xf32, #tpu.memory_space<vmem>>, vector<1x2x32xf32>
    %415 = vector.shape_cast %414 : vector<1x2x32xf32> to vector<2x32xf32>
    %416 = vector.shape_cast %412 : vector<2x32xf32> to vector<1x2x32xf32>
    tpu.vector_store %arg10[%413, %c0_136, %c0_137], %416 {strides = array<i32>} : memref<8x2x32xf32, #tpu.memory_space<vmem>>, vector<1x2x32xf32>,
    %c8_i32 = arith.constant 8 : i32
    %417 = vector.extract_strided_slice %406 {offsets = [0, 0], sizes = [2, 32], strides = [1, 1]} : vector<2x64xf32> to vector<2x32xf32>
    %c0_138 = arith.constant 0 : index
    %c0_139 = arith.constant 0 : index
    %c0_140 = arith.constant 0 : index
    %418 = vector.load %arg5[%c0_138, %c0_139, %c0_140] : memref<2x2x32xf32, #tpu.memory_space<vmem>>, vector<1x2x32xf32>
    %419 = vector.shape_cast %418 : vector<1x2x32xf32> to vector<2x32xf32>
    %420 = vector.shape_cast %417 : vector<2x32xf32> to vector<1x2x32xf32>
    tpu.vector_store %arg5[%c0_138, %c0_139, %c0_140], %420 {strides = array<i32>} : memref<2x2x32xf32, #tpu.memory_space<vmem>>, vector<1x2x32xf32>,
    %421 = vector.extract_strided_slice %406 {offsets = [0, 32], sizes = [2, 32], strides = [1, 1]} : vector<2x64xf32> to vector<2x32xf32>
    %c1_141 = arith.constant 1 : index
    %c0_142 = arith.constant 0 : index
    %c0_143 = arith.constant 0 : index
    %422 = vector.load %arg5[%c1_141, %c0_142, %c0_143] : memref<2x2x32xf32, #tpu.memory_space<vmem>>, vector<1x2x32xf32>
    %423 = vector.shape_cast %422 : vector<1x2x32xf32> to vector<2x32xf32>
    %424 = vector.shape_cast %421 : vector<2x32xf32> to vector<1x2x32xf32>
    tpu.vector_store %arg5[%c1_141, %c0_142, %c0_143], %424 {strides = array<i32>} : memref<2x2x32xf32, #tpu.memory_space<vmem>>, vector<1x2x32xf32>,
    %425 = vector.extract_strided_slice %404 {offsets = [0, 0], sizes = [2, 32], strides = [1, 1]} : vector<2x64xf32> to vector<2x32xf32>
    %c0_144 = arith.constant 0 : index
    %c0_145 = arith.constant 0 : index
    %c0_146 = arith.constant 0 : index
    %426 = vector.load %arg6[%c0_144, %c0_145, %c0_146] : memref<2x2x32xf32, #tpu.memory_space<vmem>>, vector<1x2x32xf32>
    %427 = vector.shape_cast %426 : vector<1x2x32xf32> to vector<2x32xf32>
    %428 = vector.shape_cast %425 : vector<2x32xf32> to vector<1x2x32xf32>
    tpu.vector_store %arg6[%c0_144, %c0_145, %c0_146], %428 {strides = array<i32>} : memref<2x2x32xf32, #tpu.memory_space<vmem>>, vector<1x2x32xf32>,
    %429 = vector.extract_strided_slice %404 {offsets = [0, 32], sizes = [2, 32], strides = [1, 1]} : vector<2x64xf32> to vector<2x32xf32>
    %c1_147 = arith.constant 1 : index
    %c0_148 = arith.constant 0 : index
    %c0_149 = arith.constant 0 : index
    %430 = vector.load %arg6[%c1_147, %c0_148, %c0_149] : memref<2x2x32xf32, #tpu.memory_space<vmem>>, vector<1x2x32xf32>
    %431 = vector.shape_cast %430 : vector<1x2x32xf32> to vector<2x32xf32>
    %432 = vector.shape_cast %429 : vector<2x32xf32> to vector<1x2x32xf32>
    tpu.vector_store %arg6[%c1_147, %c0_148, %c0_149], %432 {strides = array<i32>} : memref<2x2x32xf32, #tpu.memory_space<vmem>>, vector<1x2x32xf32>,
    %c0_150 = arith.constant 0 : index
    %c0_151 = arith.constant 0 : index
    %c0_152 = arith.constant 0 : index
    %433 = vector.load %arg9[%c0_150, %c0_151, %c0_152] : memref<8x2x32xf32, #tpu.memory_space<vmem>>, vector<8x2x32xf32>
    %c0_153 = arith.constant 0 : index
    %c0_154 = arith.constant 0 : index
    %c0_155 = arith.constant 0 : index
    %434 = vector.load %arg10[%c0_153, %c0_154, %c0_155] : memref<8x2x32xf32, #tpu.memory_space<vmem>>, vector<8x2x32xf32>
    %435 = arith.addf %433, %434 : vector<8x2x32xf32>
    %c0_156 = arith.constant 0 : index
    %c0_157 = arith.constant 0 : index
    %c0_158 = arith.constant 0 : index
    %436 = vector.load %arg4[%c0_156, %c0_157, %c0_158] : memref<8x2x32xf32, #tpu.memory_space<vmem>>, vector<8x2x32xf32>
    tpu.vector_store %arg4[%c0_156, %c0_157, %c0_158], %435 {strides = array<i32>} : memref<8x2x32xf32, #tpu.memory_space<vmem>>, vector<8x2x32xf32>,
    return
  }
}

</mosaic_0001>

<bundles_post_ra>
// kernel: tpu_custom_call.1
= control target key start
LH: loop header
LB: loop body
LE: loop exit
PB: predicated region body
PF: predicated region fallthrough
CT: control target
= control target key end

     0   :  { %12 = vsyncpa [#allocation7], 0  ;;  %s2162_s0 = inlined_call_operand.hbm [shape: f32[16,16], index: 0, kind: input, shape index: {}]   ;;  %s2163_s1 = inlined_call_operand.hbm [shape: f32[16,256], index: 1, kind: input, shape index: {}]   ;;  %s2164_s2 = inlined_call_operand.hbm [shape: f32[64,256], index: 2, kind: input, shape index: {}]   ;;  %s2165_s3 = inlined_call_operand.vmem [shape: f32[1,256], index: 3, kind: input, shape index: {}]   ;;  %s2166_s4 = inlined_call_operand.hbm [shape: f32[8,2,32], index: 4, kind: output, shape index: {0}]   ;;  %s2167_s5 = inlined_call_operand.hbm [shape: f32[2,2,32], index: 5, kind: output, shape index: {1}]   ;;  %s2168_s6 = inlined_call_operand.hbm [shape: f32[2,2,32], index: 6, kind: output, shape index: {2}]  }
   0x1   :  { %13 = vsyncpa [#allocation10], 0 }
   0x2   :  { %14 = vsyncpa [#allocation8], 0 }
   0x3   :  { %15 = vsyncpa [#allocation14], 0  ;;  %s1768_s21 = smov [#allocation9]   ;;  %s1628_s25 = scalar_lea.hbm %s2163_s1, 512 }
   0x4   :  { %s33_s22 = sshll.u32 %s1768_s21, 4  ;;  %p1629_p0 = scmp.ne.s32.totalorder %s2163_s1, %s1628_s25  ;;  %s34_s22 = int_to_ptr.vmem [resolvable:$true] %s33_s22 }
   0x5   :  { %p1632_p1 = scmp.lt.u32.totalorder %s1628_s25, %s2163_s1 }
   0x7   :  { %p1634_p2 = pnand %p1632_p1, %p1629_p0 }
   0x9   :  { %1637 = shalt.err (!%p1634_p2)
}
   0xa   :  { %s1638_s30 = scalar_lea.vmem %s34_s22, 512  ;;  %p1643_p4 = scmp.lt.s32.totalorder %s34_s22, %s34_s22 }
   0xb   :  { %p1639_p3 = scmp.ne.s32.totalorder %s34_s22, %s1638_s30  ;;  %p1644_p5 = scmp.lt.s32.totalorder %s1638_s30, %s1638_s30 }
   0xd   :  { %p1645_p6 = por %p1644_p5, %p1643_p4 }
   0xf   :  { %p1646_p7 = pnand %p1645_p6, %p1639_p3 }
  0x11   :  { %1649 = shalt.err (!%p1646_p7)
}
  0x12   :  { %s1769_s7 = smov 256   ;;  %s1770_s8 = smov 16  }
  0x13   :  { %39 = dma.hbm_to_vmem [thread:$0]  %s2163_s1, 512, %s34_s22, [#allocation10], %s1769_s7, %s1769_s7, %s1770_s8  }
  0x14   :  { %s1771_s11 = smov [#allocation6]   ;;  %s1650_s15 = scalar_lea.hbm %s2162_s0, 256 }
  0x15   :  { %s21_s12 = sshll.u32 %s1771_s11, 4  ;;  %p1651_p8 = scmp.ne.s32.totalorder %s2162_s0, %s1650_s15  ;;  %s22_s12 = int_to_ptr.vmem [resolvable:$true] %s21_s12 }
  0x16   :  { %p1654_p9 = scmp.lt.u32.totalorder %s1650_s15, %s2162_s0 }
  0x18   :  { %p1656_p10 = pnand %p1654_p9, %p1651_p8 }
  0x1a   :  { %1659 = shalt.err (!%p1656_p10)
}
  0x1b   :  { %s1660_s20 = scalar_lea.vmem %s22_s12, 256  ;;  %p1665_p12 = scmp.lt.s32.totalorder %s22_s12, %s22_s12 }
  0x1c   :  { %p1661_p11 = scmp.ne.s32.totalorder %s22_s12, %s1660_s20  ;;  %p1666_p13 = scmp.lt.s32.totalorder %s1660_s20, %s1660_s20 }
  0x1e   :  { %p1667_p0 = por %p1666_p13, %p1665_p12 }
  0x20   :  { %p1668_p1 = pnand %p1667_p0, %p1661_p11 }
  0x22   :  { %1671 = shalt.err (!%p1668_p1)
}
  0x23   :  { %s1772_s1 = smov 128   ;;  %s1773_s21 = smov 8  }
  0x24   :  { %27 = dma.hbm_to_vmem [thread:$0]  %s2162_s0, 256, %s22_s12, [#allocation7], %s1772_s1, %s1772_s1, %s1773_s21  }
  0x25   :  { %s1774_s24 = smov [#allocation11]   ;;  %s1672_s28 = scalar_lea.hbm %s2164_s2, 2048 }
  0x26   :  { %s45_s25 = sshll.u32 %s1774_s24, 4  ;;  %p1673_p2 = scmp.ne.s32.totalorder %s2164_s2, %s1672_s28  ;;  %s46_s25 = int_to_ptr.vmem [resolvable:$true] %s45_s25 }
  0x27   :  { %p1676_p3 = scmp.lt.u32.totalorder %s1672_s28, %s2164_s2 }
  0x29   :  { %p1678_p4 = pnand %p1676_p3, %p1673_p2 }
  0x2b   :  { %1681 = shalt.err (!%p1678_p4)
}
  0x2c   :  { %s1682_s11 = scalar_lea.vmem %s46_s25, 2048  ;;  %p1687_p6 = scmp.lt.s32.totalorder %s46_s25, %s46_s25 }
  0x2d   :  { %p1683_p5 = scmp.ne.s32.totalorder %s46_s25, %s1682_s11  ;;  %p1688_p7 = scmp.lt.s32.totalorder %s1682_s11, %s1682_s11 }
  0x2f   :  { %p1689_p8 = por %p1688_p7, %p1687_p6 }
  0x31   :  { %p1690_p9 = pnand %p1689_p8, %p1683_p5 }
  0x33   :  { %1693 = shalt.err (!%p1690_p9)
}
  0x34   :  { %51 = dma.hbm_to_vmem [thread:$0]  %s2164_s2, 2048, %s46_s25, [#allocation10], %s1769_s7, %s1769_s7, %s1770_s8  }
  0x35   :  { %1760 = dma.done.wait [#allocation7], 256  }
  0x36   :  { %1761 = vsyncadd [#allocation7], 4294967040 }
  0x37   :  { %1762 = dma.done.wait [#allocation10], 2560  }
  0x38   :  { %1763 = vsyncadd [#allocation10], 4294964736  ;;  %v1775_v0 = vmov 0.0   ;;  %v66_v1 = vld [vmem:[#allocation9 + $0x8] sm:$0xff]  ;;  %v68_v2 = vld [vmem:[#allocation9 + $0x18] sm:$0xff]  ;;  %vm81_vm0 = vcmask 130048   ;;  %v71_v33 = vlaneseq }
  0x39   :  { %152 = vmatprep.mubr.f32.mxu0 %v1775_v0  ;;  %281 = vmatprep.mubr.f32.mxu1 %v1775_v0  ;;  %v196_v3 = vld [vmem:[#allocation11 + $0x8] sm:$0xff]  ;;  %v1369_v4 = vpack.c.bf16 %v68_v2, %v66_v1  ;;  %v198_v5 = vld [vmem:[#allocation11 + $0x18] sm:$0xff]  ;;  %v65_v6 = vld [vmem:[#allocation9] sm:$0xff]  ;;  %s1777_s8 = smov 96   ;;  %s1778_s13 = smov 32   ;;  %vm308_vm1 = vcmask 261120  }
  0x3a   :  { %v67_v7 = vld [vmem:[#allocation9 + $0x10] sm:$0xff]  ;;  %v1862_v8 = vpack.c.bf16 %v198_v5, %v196_v3  ;;  %v195_v10 = vld [vmem:[#allocation11] sm:$0xff]  ;;  %v200_v13 = vld [vmem:[#allocation11 + $0x28] sm:$0xff]  ;;  %v72_v34 = vshrl.u32 %v71_v33, 7  ;;  %vm336_vm2 = vcmask 254976   ;;  %vm213_vm3 = vcmask 523264  }
  0x3b   :  { %v1371_v9 = vpack.c.bf16 %v67_v7, %v65_v6  ;;  %v197_v11 = vld [vmem:[#allocation11 + $0x10] sm:$0xff]  ;;  %1370 = vmatprep.subr.bf16.mxu0 %v1369_v4  ;;  %v202_v14 = vld [vmem:[#allocation11 + $0x38] sm:$0xff]  ;;  %v199_v15 = vld [vmem:[#allocation11 + $0x20] sm:$0xff]  ;;  %s1779_s14 = smov [#allocation13]   ;;  %s1780_s16 = smov [#allocation15]  }
  0x3c   :  { %v1864_v12 = vpack.c.bf16 %v197_v11, %v195_v10  ;;  %1374 = vmatprep.subr.bf16.mxu1 %v1862_v8  ;;  %v63_v16 = vld [vmem:[#allocation6] sm:$0xff]  ;;  %v1867_v17 = vpack.c.bf16 %v202_v14, %v200_v13  ;;  %v204_v19 = vld [vmem:[#allocation11 + $0x48] sm:$0xff]  ;;  %v206_v21 = vld [vmem:[#allocation11 + $0x58] sm:$0xff]  ;;  %v73_v35 = vsub.s32 0, %v72_v34  ;;  %v77_v37 = vsub.s32 1, %v72_v34  ;;  %s1312_s15 = sshll.u32 %s1779_s14, 4  ;;  %s1313_s15 = int_to_ptr.vmem [resolvable:$true] %s1312_s15 }
  0x3d   :  { %1372 = vmatpush1.bf16.msra.mxu0 %v1371_v9  ;;  %v201_v18 = vld [vmem:[#allocation11 + $0x30] sm:$0xff]  ;;  %v1874_v22 = vpack.c.bf16 %v206_v21, %v204_v19  ;;  %v203_v23 = vld [vmem:[#allocation11 + $0x40] sm:$0xff]  ;;  %v208_v25 = vld [vmem:[#allocation11 + $0x68] sm:$0xff]  ;;  %s1324_s17 = sshll.u32 %s1780_s16, 4  ;;  %s1694_s18 = scalar_lea.vmem %s1313_s15, 64  ;;  %s2107_s17 = int_to_ptr.vmem [resolvable:$true] %s1324_s17 }
  0x3e   :  { %1376 = vmatpush1.bf16.msra.mxu1 %v1864_v12  ;;  %v1870_v20 = vpack.c.bf16 %v201_v18, %v199_v15  ;;  %1390 = vmatprep.subr.bf16.mxu0 %v1862_v8  ;;  %v205_v24 = vld [vmem:[#allocation11 + $0x50] sm:$0xff]  ;;  %v210_v26 = vld [vmem:[#allocation11 + $0x78] sm:$0xff]  ;;  %v207_v30 = vld [vmem:[#allocation11 + $0x60] sm:$0xff]  ;;  %p1695_p10 = scmp.ne.s32.totalorder %s1313_s15, %s1694_s18  ;;  %p1699_p11 = scmp.lt.s32.totalorder %s1313_s15, %s1313_s15 }
  0x3f   :  { %1378 = vmatprep.subr.bf16.mxu1 %v1867_v17  ;;  %v64_v27 = vld [vmem:[#allocation6 + $0x8] sm:$0xff]  ;;  %v1880_v28 = vpack.c.bf16 %v205_v24, %v203_v23  ;;  %v1884_v29 = vpack.c.bf16 %v210_v26, %v208_v25  ;;  %v209_v31 = vld [vmem:[#allocation11 + $0x70] sm:$0xff]  ;;  %p1700_p12 = scmp.lt.s32.totalorder %s1694_s18, %s1694_s18 }
  0x40   :  { %1344 = vmatmul.mubr.msk.f32.vlgmr.msra.gmra.mrb[0].mxu0 %vm81_vm0, %v63_v16  ;;  %v1890_v32 = vpack.c.bf16 %v209_v31, %v207_v30  ;;  %v69_v36 = vld [vmem:[%s2165_s3] sm:$0x3]  ;;  %s1776_s3 = smov 64  }
  0x41   :  { %158 = vmatprep.mubr.f32.mxu0 %v1775_v0  ;;  %1392 = vmatpush1.bf16.msra.mxu0 %v1864_v12  ;;  %v74_v38 = vrot.slane %v69_v36, %v73_v35  ;;  %v78_v39 = vrot.slane %v69_v36, %v77_v37  ;;  %p1701_p13 = por %p1700_p12, %p1699_p11 }
  0x42   :  { %1380 = vmatpush1.bf16.msra.mxu1 %v1870_v20  ;;  %1394 = vmatprep.subr.bf16.mxu0 %v1867_v17 }
  0x43   :  { %1382 = vmatprep.subr.bf16.mxu1 %v1874_v22  ;;  %p1702_p0 = pnand %p1701_p13, %p1695_p10 }
  0x44   :  { %1345 = vmatmul.mubr.msk.f32.gmra.mrb[2].mxu0 %vm81_vm0, %v64_v27 }
  0x45   :  { %1396 = vmatpush1.bf16.msra.mxu0 %v1870_v20  ;;  %412 = vmatprep.mubr.f32.mxu0 %v1775_v0 }
  0x46   :  { %1384 = vmatpush1.bf16.msra.mxu1 %v1880_v28  ;;  %1398 = vmatprep.subr.bf16.mxu0 %v1874_v22 }
  0x47   :  { %1386 = vmatprep.subr.bf16.mxu1 %v1884_v29 }
  0x49   :  { %1400 = vmatpush1.bf16.msra.mxu0 %v1880_v28 }
  0x4a   :  { %1388 = vmatpush1.bf16.msra.mxu1 %v1890_v32  ;;  %1402 = vmatprep.subr.bf16.mxu0 %v1884_v29 }
  0x4b   :  { %1406 = vmatprep.subr.bf16.mxu1 %v1862_v8 }
  0x4d   :  { %282 = vmatmul.mubr.f32.vlgmr.msra.gmra.mrb[0].mxu1 %v1775_v0  ;;  %1404 = vmatpush1.bf16.msra.mxu0 %v1890_v32 }
  0x4e   :  { %1408 = vmatpush1.bf16.msra.mxu1 %v1864_v12  ;;  %542 = vmatprep.mubr.f32.mxu1 %v1775_v0 }
  0x4f   :  { %1410 = vmatprep.subr.bf16.mxu1 %v1867_v17  ;;  %1422 = vmatprep.subr.bf16.mxu0 %v1862_v8 }
  0x52   :  { %1412 = vmatpush1.bf16.msra.mxu1 %v1870_v20 }
  0x53   :  { %1414 = vmatprep.subr.bf16.mxu1 %v1874_v22 }
  0x56   :  { %1416 = vmatpush1.bf16.msra.mxu1 %v1880_v28 }
  0x57   :  { %1418 = vmatprep.subr.bf16.mxu1 %v1884_v29 }
  0x5a   :  { %1420 = vmatpush1.bf16.msra.mxu1 %v1890_v32 }
  0x5b   :  { %1438 = vmatprep.subr.bf16.mxu1 %v1862_v8 }
 0x113   :  { %v154_v40 = vpop.f32.mrb[0].mxu0 }
 0x114   :  { %v155_v41 = vadd.f32 %v154_v40, %v74_v38  ;;  %v156_v42 = vpop.f32.mrb[1].mxu0 }
 0x115   :  { %v157_v43 = vadd.f32 %v156_v42, %v78_v39 }
 0x116   :  { %165 = vst [vmem:[#allocation2] ss:$4 sps:$4 sm:$0xff] %v155_v41  }
 0x117   :  { %166 = vst [vmem:[#allocation3] ss:$4 sps:$4 sm:$0xff] %v157_v43   ;;  %v160_v44 = vpop.f32.mrb[2].mxu0 }
 0x118   :  { %v161_v45 = vadd.f32 %v160_v44, %v74_v38  ;;  %v162_v46 = vpop.f32.mrb[3].mxu0 }
 0x119   :  { %v163_v47 = vadd.f32 %v162_v46, %v78_v39 }
 0x11a   :  { %180 = vst [vmem:[#allocation2 + $0x8] ss:$4 sps:$4 sm:$0xff] %v161_v45  }
 0x11b   :  { %182 = vst [vmem:[#allocation3 + $0x8] ss:$4 sps:$4 sm:$0xff] %v163_v47  }
 0x11d   :  { %v211_v48 = vld [vmem:[#allocation2] sm:$0x3]  ;;  %v344_v19 = vld [vmem:[#allocation2 + $0x2] sm:$0x3] }
 0x120   :  { %v283_v49 = vpop.f32.mrb[0].mxu1 }
 0x121   :  { %v288_v50 = vadd.f32 %v283_v49, %v211_v48  ;;  %v285_v51 = vpop.f32.mrb[1].mxu1 }
 0x122   :  { %v212_v52 = vld [vmem:[#allocation3 + $0xe] sm:$0x3]  ;;  %v345_v24 = vld [vmem:[#allocation3 + $0xc] sm:$0x3] }
 0x123   :  { %v1346_v53 = vmul.f32 -1.442695, %v288_v50  ;;  %1516 = vtanh.f32 %v288_v50  ;;  %v289_v54 = vadd.f32 %v285_v51, %v212_v52 }
 0x125   :  { %1518 = vpow2.f32 %v1346_v53  ;;  %v1347_v55 = vmul.f32 -1.442695, %v289_v54 }
 0x126   :  { %1520 = vtanh.f32 %v289_v54 }
 0x127   :  { %1522 = vpow2.f32 %v1347_v55  ;;  %v474_v55 = vld [vmem:[#allocation2 + $0x4] sm:$0x3] }
 0x12d   :  { %v1517_v56 = vpop.eup %1516 }
 0x12e   :  { %316 = vrot.lane.b32.xlu1 %v1517_v56, %s1776_s3 }
 0x12f   :  { %v1519_v57 = vpop.eup %1518 }
 0x130   :  { %v1521_v58 = vpop.eup %1520  ;;  %v296_v61 = vadd.f32 1.0, %v1519_v57 }
 0x131   :  { %v1523_v59 = vpop.eup %1522 }
 0x132   :  { %v297_v60 = vadd.f32 1.0, %v1523_v59  ;;  %320 = vrot.lane.b32.xlu1 %v1521_v58, %s1777_s8  ;;  %v475_v58 = vld [vmem:[#allocation3 + $0xa] sm:$0x3] }
 0x134   :  { %1524 = vrcp.f32 %v297_v60 }
 0x135   :  { %1526 = vrcp.f32 %v296_v61 }
 0x13e   :  { %v1525_v62 = vpop.eup %1524 }
 0x13f   :  { %305 = vrot.lane.b32.xlu0 %v1525_v62, %s1778_s13  ;;  %327 = vrot.lane.b32.xlu1 %v1525_v62, %s1776_s3  ;;  %v1527_v63 = vpop.eup %1526 }
 0x143   :  { %311 = vrot.lane.b32.xlu0 %v1527_v63, %s1777_s8 }
 0x147   :  { %324 = vrot.lane.b32.xlu0 %v1527_v63, %s1778_s13 }
 0x1a0   :  { %v317_v1 = vpop.permute.xlu1 %316 }
 0x1a4   :  { %v321_v3 = vpop.permute.xlu1 %320 }
 0x1a5   :  { %v323_v6 = vsel %vm308_vm1, %v317_v1, %v321_v3 }
 0x1b1   :  { %v306_v2 = vpop.permute.xlu0 %305  ;;  %v328_v14 = vpop.permute.xlu1 %327 }
 0x1b2   :  { %v309_v4 = vsel %vm308_vm1, %v1527_v63, %v306_v2 }
 0x1b3   :  { %v332_v9 = vmul.f32 %v323_v6, %v309_v4 }
 0x1b5   :  { %v312_v5 = vpop.permute.xlu0 %311 }
 0x1b6   :  { %v314_v7 = vsel %vm308_vm1, %v312_v5, %v1525_v62 }
 0x1b7   :  { %v331_v10 = vmul.f32 0.0, %v314_v7 }
 0x1b9   :  { %v333_v11 = vadd.f32 %v332_v9, %v331_v10  ;;  %v325_v13 = vpop.permute.xlu0 %324 }
 0x1ba   :  { %v330_v16 = vsel %vm308_vm1, %v325_v13, %v328_v14 }
 0x1bb   :  { %1528 = vtanh.f32 %v333_v11 }
 0x1c5   :  { %v1529_v15 = vpop.eup %1528 }
 0x1c6   :  { %v1923_v18 = vmul.f32 %v1529_v15, %v330_v16 }
 0x1c8   :  { %337 = vst.msk [vmem:[#allocation4] sm:$0x3] %vm336_vm2, %v1923_v18  ;;  %1348 = vmatmul.mubr.msk.f32.vlgmr.msra.gmra.mrb[4].mxu0 %vm213_vm3, %v1923_v18 }
 0x1c9   :  { %1424 = vmatpush1.bf16.msra.mxu0 %v1864_v12  ;;  %672 = vmatprep.mubr.f32.mxu0 %v1775_v0 }
 0x1ca   :  { %1426 = vmatprep.subr.bf16.mxu0 %v1867_v17 }
 0x1cd   :  { %1428 = vmatpush1.bf16.msra.mxu0 %v1870_v20 }
 0x1ce   :  { %1430 = vmatprep.subr.bf16.mxu0 %v1874_v22 }
 0x1d1   :  { %1432 = vmatpush1.bf16.msra.mxu0 %v1880_v28 }
 0x1d2   :  { %1434 = vmatprep.subr.bf16.mxu0 %v1884_v29 }
 0x1d5   :  { %1436 = vmatpush1.bf16.msra.mxu0 %v1890_v32 }
 0x1d6   :  { %1454 = vmatprep.subr.bf16.mxu0 %v1862_v8 }
 0x29b   :  { %v414_v21 = vpop.f32.mrb[4].mxu0 }
 0x29c   :  { %v419_v23 = vadd.f32 %v414_v21, %v344_v19  ;;  %v416_v25 = vpop.f32.mrb[5].mxu0 }
 0x29d   :  { %v420_v26 = vadd.f32 %v416_v25, %v345_v24 }
 0x29e   :  { %v1349_v27 = vmul.f32 -1.442695, %v419_v23 }
 0x29f   :  { %v1350_v30 = vmul.f32 -1.442695, %v420_v26 }
 0x2a0   :  { %1530 = vpow2.f32 %v1349_v27 }
 0x2a1   :  { %1532 = vpow2.f32 %v1350_v30 }
 0x2aa   :  { %v1531_v31 = vpop.eup %1530 }
 0x2ab   :  { %v1533_v33 = vpop.eup %1532  ;;  %v427_v34 = vadd.f32 1.0, %v1531_v31  ;;  %v604_v31 = vld [vmem:[#allocation2 + $0x6] sm:$0x3] }
 0x2ac   :  { %v428_v35 = vadd.f32 1.0, %v1533_v33 }
 0x2ad   :  { %1534 = vrcp.f32 %v427_v34 }
 0x2ae   :  { %1536 = vrcp.f32 %v428_v35  ;;  %v605_v35 = vld [vmem:[#allocation3 + $0x8] sm:$0x3] }
 0x2af   :  { %1538 = vtanh.f32 %v420_v26 }
 0x2b0   :  { %1540 = vtanh.f32 %v419_v23 }
 0x2b7   :  { %v1535_v36 = vpop.eup %1534 }
 0x2b8   :  { %v1537_v37 = vpop.eup %1536  ;;  %441 = vrot.lane.b32.xlu1 %v1535_v36, %s1777_s8 }
 0x2b9   :  { %436 = vrot.lane.b32.xlu0 %v1537_v37, %s1778_s13  ;;  %v1539_v38 = vpop.eup %1538 }
 0x2ba   :  { %v1541_v39 = vpop.eup %1540 }
 0x2bc   :  { %450 = vrot.lane.b32.xlu1 %v1539_v38, %s1777_s8 }
 0x2bd   :  { %446 = vrot.lane.b32.xlu0 %v1541_v39, %s1776_s3 }
 0x2c0   :  { %457 = vrot.lane.b32.xlu1 %v1537_v37, %s1776_s3 }
 0x2c1   :  { %454 = vrot.lane.b32.xlu0 %v1535_v36, %s1778_s13 }
 0x32a   :  { %v442_v40 = vpop.permute.xlu1 %441 }
 0x32b   :  { %v437_v41 = vpop.permute.xlu0 %436  ;;  %v444_v42 = vsel %vm308_vm1, %v442_v40, %v1537_v37 }
 0x32c   :  { %v439_v45 = vsel %vm308_vm1, %v1535_v36, %v437_v41  ;;  %v461_v47 = vmul.f32 %v444_v42, %v333_v11 }
 0x32e   :  { %v451_v43 = vpop.permute.xlu1 %450 }
 0x32f   :  { %v447_v44 = vpop.permute.xlu0 %446 }
 0x330   :  { %v453_v46 = vsel %vm308_vm1, %v447_v44, %v451_v43 }
 0x331   :  { %v462_v48 = vmul.f32 %v453_v46, %v439_v45 }
 0x332   :  { %v458_v50 = vpop.permute.xlu1 %457 }
 0x333   :  { %v463_v49 = vadd.f32 %v462_v48, %v461_v47  ;;  %v455_v51 = vpop.permute.xlu0 %454 }
 0x334   :  { %v460_v53 = vsel %vm308_vm1, %v455_v51, %v458_v50 }
 0x335   :  { %1542 = vtanh.f32 %v463_v49 }
 0x33f   :  { %v1543_v52 = vpop.eup %1542 }
 0x340   :  { %v1948_v54 = vmul.f32 %v1543_v52, %v460_v53 }
 0x342   :  { %467 = vst.msk [vmem:[#allocation4 + $0x2] sm:$0x3] %vm336_vm2, %v1948_v54  ;;  %1351 = vmatmul.mubr.msk.f32.vlgmr.msra.gmra.mrb[2].mxu1 %vm213_vm3, %v1948_v54 }
 0x343   :  { %1440 = vmatpush1.bf16.msra.mxu1 %v1864_v12  ;;  %802 = vmatprep.mubr.f32.mxu1 %v1775_v0 }
 0x344   :  { %1442 = vmatprep.subr.bf16.mxu1 %v1867_v17 }
 0x347   :  { %1444 = vmatpush1.bf16.msra.mxu1 %v1870_v20 }
 0x348   :  { %1446 = vmatprep.subr.bf16.mxu1 %v1874_v22 }
 0x34b   :  { %1448 = vmatpush1.bf16.msra.mxu1 %v1880_v28 }
 0x34c   :  { %1450 = vmatprep.subr.bf16.mxu1 %v1884_v29 }
 0x34f   :  { %1452 = vmatpush1.bf16.msra.mxu1 %v1890_v32 }
 0x350   :  { %1470 = vmatprep.subr.bf16.mxu1 %v1862_v8 }
 0x415   :  { %v544_v56 = vpop.f32.mrb[2].mxu1 }
 0x416   :  { %v549_v57 = vadd.f32 %v544_v56, %v474_v55  ;;  %v546_v59 = vpop.f32.mrb[3].mxu1 }
 0x417   :  { %v550_v60 = vadd.f32 %v546_v59, %v475_v58 }
 0x418   :  { %v1352_v61 = vmul.f32 -1.442695, %v549_v57 }
 0x419   :  { %v1353_v62 = vmul.f32 -1.442695, %v550_v60 }
 0x41a   :  { %1544 = vpow2.f32 %v1352_v61 }
 0x41b   :  { %1546 = vpow2.f32 %v1353_v62 }
 0x424   :  { %v1545_v63 = vpop.eup %1544 }
 0x425   :  { %v1547_v1 = vpop.eup %1546  ;;  %v557_v2 = vadd.f32 1.0, %v1545_v63  ;;  %v734_v63 = vld [vmem:[#allocation2 + $0x8] sm:$0x3] }
 0x426   :  { %v558_v3 = vadd.f32 1.0, %v1547_v1 }
 0x427   :  { %1548 = vrcp.f32 %v557_v2 }
 0x428   :  { %1550 = vrcp.f32 %v558_v3  ;;  %v735_v3 = vld [vmem:[#allocation3 + $0x6] sm:$0x3] }
 0x429   :  { %1552 = vtanh.f32 %v550_v60 }
 0x42a   :  { %1554 = vtanh.f32 %v549_v57 }
 0x431   :  { %v1549_v4 = vpop.eup %1548 }
 0x432   :  { %v1551_v5 = vpop.eup %1550  ;;  %571 = vrot.lane.b32.xlu1 %v1549_v4, %s1777_s8 }
 0x433   :  { %566 = vrot.lane.b32.xlu0 %v1551_v5, %s1778_s13  ;;  %v1553_v6 = vpop.eup %1552 }
 0x434   :  { %v1555_v7 = vpop.eup %1554 }
 0x436   :  { %580 = vrot.lane.b32.xlu1 %v1553_v6, %s1777_s8 }
 0x437   :  { %576 = vrot.lane.b32.xlu0 %v1555_v7, %s1776_s3 }
 0x43a   :  { %587 = vrot.lane.b32.xlu1 %v1551_v5, %s1776_s3 }
 0x43b   :  { %584 = vrot.lane.b32.xlu0 %v1549_v4, %s1778_s13 }
 0x4a4   :  { %v572_v9 = vpop.permute.xlu1 %571 }
 0x4a5   :  { %v567_v10 = vpop.permute.xlu0 %566  ;;  %v574_v11 = vsel %vm308_vm1, %v572_v9, %v1551_v5 }
 0x4a6   :  { %v569_v15 = vsel %vm308_vm1, %v1549_v4, %v567_v10  ;;  %v591_v19 = vmul.f32 %v574_v11, %v463_v49 }
 0x4a8   :  { %v581_v13 = vpop.permute.xlu1 %580 }
 0x4a9   :  { %v577_v14 = vpop.permute.xlu0 %576 }
 0x4aa   :  { %v583_v16 = vsel %vm308_vm1, %v577_v14, %v581_v13 }
 0x4ab   :  { %v592_v21 = vmul.f32 %v583_v16, %v569_v15 }
 0x4ac   :  { %v588_v24 = vpop.permute.xlu1 %587 }
 0x4ad   :  { %v593_v23 = vadd.f32 %v592_v21, %v591_v19  ;;  %v585_v25 = vpop.permute.xlu0 %584 }
 0x4ae   :  { %v590_v27 = vsel %vm308_vm1, %v585_v25, %v588_v24 }
 0x4af   :  { %1556 = vtanh.f32 %v593_v23 }
 0x4b9   :  { %v1557_v26 = vpop.eup %1556 }
 0x4ba   :  { %v1973_v30 = vmul.f32 %v1557_v26, %v590_v27 }
 0x4bc   :  { %597 = vst.msk [vmem:[#allocation4 + $0x4] sm:$0x3] %vm336_vm2, %v1973_v30  ;;  %1354 = vmatmul.mubr.msk.f32.vlgmr.msra.gmra.mrb[6].mxu0 %vm213_vm3, %v1973_v30 }
 0x4bd   :  { %1456 = vmatpush1.bf16.msra.mxu0 %v1864_v12  ;;  %932 = vmatprep.mubr.f32.mxu0 %v1775_v0 }
 0x4be   :  { %1458 = vmatprep.subr.bf16.mxu0 %v1867_v17 }
 0x4c1   :  { %1460 = vmatpush1.bf16.msra.mxu0 %v1870_v20 }
 0x4c2   :  { %1462 = vmatprep.subr.bf16.mxu0 %v1874_v22 }
 0x4c5   :  { %1464 = vmatpush1.bf16.msra.mxu0 %v1880_v28 }
 0x4c6   :  { %1466 = vmatprep.subr.bf16.mxu0 %v1884_v29 }
 0x4c9   :  { %1468 = vmatpush1.bf16.msra.mxu0 %v1890_v32 }
 0x4ca   :  { %1486 = vmatprep.subr.bf16.mxu0 %v1862_v8 }
 0x58f   :  { %v674_v33 = vpop.f32.mrb[6].mxu0 }
 0x590   :  { %v679_v34 = vadd.f32 %v674_v33, %v604_v31  ;;  %v676_v36 = vpop.f32.mrb[7].mxu0 }
 0x591   :  { %v680_v37 = vadd.f32 %v676_v36, %v605_v35 }
 0x592   :  { %v1355_v38 = vmul.f32 -1.442695, %v679_v34 }
 0x593   :  { %v1356_v39 = vmul.f32 -1.442695, %v680_v37 }
 0x594   :  { %1558 = vpow2.f32 %v1355_v38 }
 0x595   :  { %1560 = vpow2.f32 %v1356_v39 }
 0x59e   :  { %v1559_v40 = vpop.eup %1558 }
 0x59f   :  { %v1561_v41 = vpop.eup %1560  ;;  %v687_v42 = vadd.f32 1.0, %v1559_v40 }
 0x5a0   :  { %v688_v43 = vadd.f32 1.0, %v1561_v41  ;;  %v864_v41 = vld [vmem:[#allocation2 + $0xa] sm:$0x3] }
 0x5a1   :  { %1562 = vrcp.f32 %v687_v42 }
 0x5a2   :  { %1564 = vrcp.f32 %v688_v43 }
 0x5a3   :  { %1566 = vtanh.f32 %v680_v37 }
 0x5a4   :  { %1568 = vtanh.f32 %v679_v34 }
 0x5ab   :  { %v1563_v44 = vpop.eup %1562 }
 0x5ac   :  { %v1565_v8 = vpop.eup %1564  ;;  %701 = vrot.lane.b32.xlu1 %v1563_v44, %s1777_s8 }
 0x5ad   :  { %696 = vrot.lane.b32.xlu0 %v1565_v8, %s1778_s13  ;;  %v1567_v45 = vpop.eup %1566 }
 0x5ae   :  { %v1569_v46 = vpop.eup %1568 }
 0x5b0   :  { %710 = vrot.lane.b32.xlu1 %v1567_v45, %s1777_s8 }
 0x5b1   :  { %706 = vrot.lane.b32.xlu0 %v1569_v46, %s1776_s3 }
 0x5b4   :  { %717 = vrot.lane.b32.xlu1 %v1565_v8, %s1776_s3 }
 0x5b5   :  { %714 = vrot.lane.b32.xlu0 %v1563_v44, %s1778_s13 }
 0x61e   :  { %v702_v47 = vpop.permute.xlu1 %701 }
 0x61f   :  { %v697_v48 = vpop.permute.xlu0 %696  ;;  %v704_v49 = vsel %vm308_vm1, %v702_v47, %v1565_v8 }
 0x620   :  { %v699_v52 = vsel %vm308_vm1, %v1563_v44, %v697_v48  ;;  %v721_v55 = vmul.f32 %v704_v49, %v593_v23  ;;  %v865_v44 = vld [vmem:[#allocation3 + $0x4] sm:$0x3] }
 0x622   :  { %v711_v50 = vpop.permute.xlu1 %710 }
 0x623   :  { %v707_v51 = vpop.permute.xlu0 %706 }
 0x624   :  { %v713_v53 = vsel %vm308_vm1, %v707_v51, %v711_v50 }
 0x625   :  { %v722_v56 = vmul.f32 %v713_v53, %v699_v52 }
 0x626   :  { %v718_v58 = vpop.permute.xlu1 %717 }
 0x627   :  { %v723_v57 = vadd.f32 %v722_v56, %v721_v55  ;;  %v715_v59 = vpop.permute.xlu0 %714 }
 0x628   :  { %v720_v61 = vsel %vm308_vm1, %v715_v59, %v718_v58 }
 0x629   :  { %1570 = vtanh.f32 %v723_v57 }
 0x633   :  { %v1571_v60 = vpop.eup %1570 }
 0x634   :  { %v1998_v62 = vmul.f32 %v1571_v60, %v720_v61 }
 0x636   :  { %727 = vst.msk [vmem:[#allocation4 + $0x6] sm:$0x3] %vm336_vm2, %v1998_v62  ;;  %1357 = vmatmul.mubr.msk.f32.vlgmr.msra.gmra.mrb[4].mxu1 %vm213_vm3, %v1998_v62 }
 0x637   :  { %1472 = vmatpush1.bf16.msra.mxu1 %v1864_v12  ;;  %1062 = vmatprep.mubr.f32.mxu1 %v1775_v0 }
 0x638   :  { %1474 = vmatprep.subr.bf16.mxu1 %v1867_v17 }
 0x63b   :  { %1476 = vmatpush1.bf16.msra.mxu1 %v1870_v20 }
 0x63c   :  { %1478 = vmatprep.subr.bf16.mxu1 %v1874_v22 }
 0x63f   :  { %1480 = vmatpush1.bf16.msra.mxu1 %v1880_v28 }
 0x640   :  { %1482 = vmatprep.subr.bf16.mxu1 %v1884_v29 }
 0x643   :  { %1484 = vmatpush1.bf16.msra.mxu1 %v1890_v32 }
 0x709   :  { %v804_v1 = vpop.f32.mrb[4].mxu1 }
 0x70a   :  { %v809_v2 = vadd.f32 %v804_v1, %v734_v63  ;;  %v806_v4 = vpop.f32.mrb[5].mxu1 }
 0x70b   :  { %v810_v5 = vadd.f32 %v806_v4, %v735_v3 }
 0x70c   :  { %v1358_v6 = vmul.f32 -1.442695, %v809_v2 }
 0x70d   :  { %v1359_v7 = vmul.f32 -1.442695, %v810_v5 }
 0x70e   :  { %1572 = vpow2.f32 %v1358_v6 }
 0x70f   :  { %1574 = vpow2.f32 %v1359_v7 }
 0x718   :  { %v1573_v9 = vpop.eup %1572 }
 0x719   :  { %v1575_v10 = vpop.eup %1574  ;;  %v817_v11 = vadd.f32 1.0, %v1573_v9 }
 0x71a   :  { %v818_v13 = vadd.f32 1.0, %v1575_v10 }
 0x71b   :  { %1576 = vrcp.f32 %v817_v11 }
 0x71c   :  { %1578 = vrcp.f32 %v818_v13 }
 0x71d   :  { %1580 = vtanh.f32 %v810_v5  ;;  %v995_v5 = vld [vmem:[#allocation3 + $0x2] sm:$0x3] }
 0x71e   :  { %1582 = vtanh.f32 %v809_v2  ;;  %v994_v2 = vld [vmem:[#allocation2 + $0xc] sm:$0x3] }
 0x725   :  { %v1577_v14 = vpop.eup %1576 }
 0x726   :  { %v1579_v15 = vpop.eup %1578  ;;  %831 = vrot.lane.b32.xlu1 %v1577_v14, %s1777_s8 }
 0x727   :  { %826 = vrot.lane.b32.xlu0 %v1579_v15, %s1778_s13  ;;  %v1581_v16 = vpop.eup %1580 }
 0x728   :  { %v1583_v19 = vpop.eup %1582 }
 0x72a   :  { %840 = vrot.lane.b32.xlu1 %v1581_v16, %s1777_s8 }
 0x72b   :  { %836 = vrot.lane.b32.xlu0 %v1583_v19, %s1776_s3 }
 0x72e   :  { %847 = vrot.lane.b32.xlu1 %v1579_v15, %s1776_s3 }
 0x72f   :  { %844 = vrot.lane.b32.xlu0 %v1577_v14, %s1778_s13 }
 0x798   :  { %v832_v21 = vpop.permute.xlu1 %831 }
 0x799   :  { %v827_v23 = vpop.permute.xlu0 %826  ;;  %v834_v24 = vsel %vm308_vm1, %v832_v21, %v1579_v15 }
 0x79a   :  { %v829_v27 = vsel %vm308_vm1, %v1577_v14, %v827_v23  ;;  %v851_v33 = vmul.f32 %v834_v24, %v723_v57 }
 0x79c   :  { %v841_v25 = vpop.permute.xlu1 %840 }
 0x79d   :  { %v837_v26 = vpop.permute.xlu0 %836 }
 0x79e   :  { %v843_v31 = vsel %vm308_vm1, %v837_v26, %v841_v25 }
 0x79f   :  { %v852_v34 = vmul.f32 %v843_v31, %v829_v27 }
 0x7a0   :  { %v848_v36 = vpop.permute.xlu1 %847 }
 0x7a1   :  { %v853_v35 = vadd.f32 %v852_v34, %v851_v33  ;;  %v845_v37 = vpop.permute.xlu0 %844 }
 0x7a2   :  { %v850_v39 = vsel %vm308_vm1, %v845_v37, %v848_v36 }
 0x7a3   :  { %1584 = vtanh.f32 %v853_v35 }
 0x7ad   :  { %v1585_v38 = vpop.eup %1584 }
 0x7ae   :  { %v2022_v40 = vmul.f32 %v1585_v38, %v850_v39 }
 0x7b0   :  { %857 = vst.msk [vmem:[#allocation4 + $0x8] sm:$0x3] %vm336_vm2, %v2022_v40  ;;  %1360 = vmatmul.mubr.msk.f32.vlgmr.msra.gmra.mrb[8].mxu0 %vm213_vm3, %v2022_v40 }
 0x7b1   :  { %1488 = vmatpush1.bf16.msra.mxu0 %v1864_v12  ;;  %1192 = vmatprep.mubr.f32.mxu0 %v1775_v0 }
 0x7b2   :  { %1490 = vmatprep.subr.bf16.mxu0 %v1867_v17 }
 0x7b5   :  { %1492 = vmatpush1.bf16.msra.mxu0 %v1870_v20 }
 0x7b6   :  { %1494 = vmatprep.subr.bf16.mxu0 %v1874_v22 }
 0x7b9   :  { %1496 = vmatpush1.bf16.msra.mxu0 %v1880_v28 }
 0x7ba   :  { %1498 = vmatprep.subr.bf16.mxu0 %v1884_v29 }
 0x7bd   :  { %1500 = vmatpush1.bf16.msra.mxu0 %v1890_v32 }
 0x883   :  { %v934_v42 = vpop.f32.mrb[8].mxu0 }
 0x884   :  { %v939_v43 = vadd.f32 %v934_v42, %v864_v41  ;;  %v936_v8 = vpop.f32.mrb[9].mxu0 }
 0x885   :  { %v940_v12 = vadd.f32 %v936_v8, %v865_v44  ;;  %v1124_v44 = vld [vmem:[#allocation2 + $0xe] sm:$0x3] }
 0x886   :  { %v1361_v45 = vmul.f32 -1.442695, %v939_v43 }
 0x887   :  { %v1362_v0 = vmul.f32 -1.442695, %v940_v12 }
 0x888   :  { %1586 = vpow2.f32 %v1361_v45  ;;  %v1125_v45 = vld [vmem:[#allocation3] sm:$0x3] }
 0x889   :  { %1588 = vpow2.f32 %v1362_v0 }
 0x892   :  { %v1587_v17 = vpop.eup %1586 }
 0x893   :  { %v1589_v20 = vpop.eup %1588  ;;  %v947_v46 = vadd.f32 1.0, %v1587_v17 }
 0x894   :  { %v948_v22 = vadd.f32 1.0, %v1589_v20 }
 0x895   :  { %1590 = vrcp.f32 %v947_v46 }
 0x896   :  { %1592 = vrcp.f32 %v948_v22 }
 0x897   :  { %1594 = vtanh.f32 %v940_v12 }
 0x898   :  { %1596 = vtanh.f32 %v939_v43 }
 0x89f   :  { %v1591_v28 = vpop.eup %1590 }
 0x8a0   :  { %v1593_v29 = vpop.eup %1592  ;;  %961 = vrot.lane.b32.xlu1 %v1591_v28, %s1777_s8 }
 0x8a1   :  { %956 = vrot.lane.b32.xlu0 %v1593_v29, %s1778_s13  ;;  %v1595_v32 = vpop.eup %1594 }
 0x8a2   :  { %v1597_v47 = vpop.eup %1596 }
 0x8a4   :  { %970 = vrot.lane.b32.xlu1 %v1595_v32, %s1777_s8 }
 0x8a5   :  { %966 = vrot.lane.b32.xlu0 %v1597_v47, %s1776_s3 }
 0x8a8   :  { %977 = vrot.lane.b32.xlu1 %v1593_v29, %s1776_s3 }
 0x8a9   :  { %974 = vrot.lane.b32.xlu0 %v1591_v28, %s1778_s13 }
 0x912   :  { %v962_v48 = vpop.permute.xlu1 %961 }
 0x913   :  { %v957_v49 = vpop.permute.xlu0 %956  ;;  %v964_v50 = vsel %vm308_vm1, %v962_v48, %v1593_v29 }
 0x914   :  { %v959_v53 = vsel %vm308_vm1, %v1591_v28, %v957_v49  ;;  %v981_v56 = vmul.f32 %v964_v50, %v853_v35 }
 0x916   :  { %v971_v51 = vpop.permute.xlu1 %970 }
 0x917   :  { %v967_v52 = vpop.permute.xlu0 %966 }
 0x918   :  { %v973_v55 = vsel %vm308_vm1, %v967_v52, %v971_v51 }
 0x919   :  { %v982_v57 = vmul.f32 %v973_v55, %v959_v53 }
 0x91a   :  { %v978_v59 = vpop.permute.xlu1 %977 }
 0x91b   :  { %v983_v58 = vadd.f32 %v982_v57, %v981_v56  ;;  %v975_v60 = vpop.permute.xlu0 %974 }
 0x91c   :  { %v980_v63 = vsel %vm308_vm1, %v975_v60, %v978_v59 }
 0x91d   :  { %1598 = vtanh.f32 %v983_v58 }
 0x927   :  { %v1599_v61 = vpop.eup %1598 }
 0x928   :  { %v2046_v1 = vmul.f32 %v1599_v61, %v980_v63 }
 0x92a   :  { %987 = vst.msk [vmem:[#allocation4 + $0xa] sm:$0x3] %vm336_vm2, %v2046_v1  ;;  %1363 = vmatmul.mubr.msk.f32.vlgmr.msra.gmra.mrb[6].mxu1 %vm213_vm3, %v2046_v1 }
 0x9fd   :  { %v1064_v3 = vpop.f32.mrb[6].mxu1 }
 0x9fe   :  { %v1069_v4 = vadd.f32 %v1064_v3, %v994_v2  ;;  %v1066_v6 = vpop.f32.mrb[7].mxu1 }
 0x9ff   :  { %v1070_v7 = vadd.f32 %v1066_v6, %v995_v5 }
 0xa00   :  { %v1364_v9 = vmul.f32 -1.442695, %v1069_v4 }
 0xa01   :  { %v1365_v10 = vmul.f32 -1.442695, %v1070_v7 }
 0xa02   :  { %1600 = vpow2.f32 %v1364_v9 }
 0xa03   :  { %1602 = vpow2.f32 %v1365_v10  ;;  %v1267_v10 = vld [vmem:[#allocation4 + $0x8] sm:$0x3] }
 0xa0c   :  { %v1601_v11 = vpop.eup %1600 }
 0xa0d   :  { %v1603_v13 = vpop.eup %1602  ;;  %v1077_v14 = vadd.f32 1.0, %v1601_v11 }
 0xa0e   :  { %v1078_v15 = vadd.f32 1.0, %v1603_v13 }
 0xa0f   :  { %1604 = vrcp.f32 %v1077_v14  ;;  %v1268_v14 = vld [vmem:[#allocation4 + $0xa] sm:$0x3] }
 0xa10   :  { %1606 = vrcp.f32 %v1078_v15 }
 0xa11   :  { %1608 = vtanh.f32 %v1070_v7 }
 0xa12   :  { %1610 = vtanh.f32 %v1069_v4 }
 0xa19   :  { %v1605_v16 = vpop.eup %1604 }
 0xa1a   :  { %v1607_v19 = vpop.eup %1606  ;;  %1091 = vrot.lane.b32.xlu1 %v1605_v16, %s1777_s8 }
 0xa1b   :  { %1086 = vrot.lane.b32.xlu0 %v1607_v19, %s1778_s13  ;;  %v1609_v21 = vpop.eup %1608 }
 0xa1c   :  { %v1611_v23 = vpop.eup %1610 }
 0xa1e   :  { %1100 = vrot.lane.b32.xlu1 %v1609_v21, %s1777_s8  ;;  %v1265_v21 = vld [vmem:[#allocation4 + $0x4] sm:$0x3] }
 0xa1f   :  { %1096 = vrot.lane.b32.xlu0 %v1611_v23, %s1776_s3 }
 0xa22   :  { %1107 = vrot.lane.b32.xlu1 %v1607_v19, %s1776_s3 }
 0xa23   :  { %1104 = vrot.lane.b32.xlu0 %v1605_v16, %s1778_s13 }
 0xa8c   :  { %v1092_v24 = vpop.permute.xlu1 %1091 }
 0xa8d   :  { %v1087_v25 = vpop.permute.xlu0 %1086  ;;  %v1094_v26 = vsel %vm308_vm1, %v1092_v24, %v1607_v19 }
 0xa8e   :  { %v1089_v33 = vsel %vm308_vm1, %v1605_v16, %v1087_v25  ;;  %v1111_v35 = vmul.f32 %v1094_v26, %v983_v58  ;;  %v1266_v25 = vld [vmem:[#allocation4 + $0x6] sm:$0x3] }
 0xa90   :  { %v1101_v27 = vpop.permute.xlu1 %1100 }
 0xa91   :  { %v1097_v31 = vpop.permute.xlu0 %1096 }
 0xa92   :  { %v1103_v34 = vsel %vm308_vm1, %v1097_v31, %v1101_v27 }
 0xa93   :  { %v1112_v36 = vmul.f32 %v1103_v34, %v1089_v33 }
 0xa94   :  { %v1108_v38 = vpop.permute.xlu1 %1107 }
 0xa95   :  { %v1113_v37 = vadd.f32 %v1112_v36, %v1111_v35  ;;  %v1105_v39 = vpop.permute.xlu0 %1104  ;;  %v1264_v35 = vld [vmem:[#allocation4 + $0x2] sm:$0x3] }
 0xa96   :  { %v1110_v42 = vsel %vm308_vm1, %v1105_v39, %v1108_v38 }
 0xa97   :  { %1612 = vtanh.f32 %v1113_v37 }
 0xaa1   :  { %v1613_v41 = vpop.eup %1612 }
 0xaa2   :  { %v1115_v43 = vmul.f32 %v1613_v41, %v1110_v42 }
 0xaa4   :  { %1117 = vst.msk [vmem:[#allocation4 + $0xc] sm:$0x3] %vm336_vm2, %v1115_v43  ;;  %1366 = vmatmul.mubr.msk.f32.vlgmr.msra.gmra.mrb[10].mxu0 %vm213_vm3, %v1115_v43 }
 0xb77   :  { %v1194_v8 = vpop.f32.mrb[10].mxu0 }
 0xb78   :  { %v1199_v12 = vadd.f32 %v1194_v8, %v1124_v44  ;;  %v1196_v0 = vpop.f32.mrb[11].mxu0 }
 0xb79   :  { %v1200_v17 = vadd.f32 %v1196_v0, %v1125_v45 }
 0xb7a   :  { %v1367_v20 = vmul.f32 -1.442695, %v1199_v12 }
 0xb7b   :  { %v1368_v46 = vmul.f32 -1.442695, %v1200_v17 }
 0xb7c   :  { %1614 = vpow2.f32 %v1367_v20 }
 0xb7d   :  { %1616 = vpow2.f32 %v1368_v46 }
 0xb86   :  { %v1615_v22 = vpop.eup %1614 }
 0xb87   :  { %v1617_v28 = vpop.eup %1616  ;;  %v1207_v29 = vadd.f32 1.0, %v1615_v22 }
 0xb88   :  { %v1208_v32 = vadd.f32 1.0, %v1617_v28 }
 0xb89   :  { %1618 = vrcp.f32 %v1207_v29 }
 0xb8a   :  { %1620 = vrcp.f32 %v1208_v32 }
 0xb8b   :  { %1622 = vtanh.f32 %v1200_v17 }
 0xb8c   :  { %1624 = vtanh.f32 %v1199_v12 }
 0xb93   :  { %v1619_v47 = vpop.eup %1618 }
 0xb94   :  { %v1621_v48 = vpop.eup %1620  ;;  %1221 = vrot.lane.b32.xlu1 %v1619_v47, %s1777_s8 }
 0xb95   :  { %1216 = vrot.lane.b32.xlu0 %v1621_v48, %s1778_s13  ;;  %v1623_v49 = vpop.eup %1622 }
 0xb96   :  { %v1625_v50 = vpop.eup %1624 }
 0xb98   :  { %1230 = vrot.lane.b32.xlu1 %v1623_v49, %s1777_s8 }
 0xb99   :  { %1226 = vrot.lane.b32.xlu0 %v1625_v50, %s1776_s3 }
 0xb9c   :  { %1237 = vrot.lane.b32.xlu1 %v1621_v48, %s1776_s3 }
 0xb9d   :  { %1234 = vrot.lane.b32.xlu0 %v1619_v47, %s1778_s13 }
 0xba0   :  { %469 = vrot.lane.b32.xlu1 %v1948_v54, %s1777_s8 }
 0xba1   :  { %339 = vrot.lane.b32.xlu0 %v1923_v18, %s1777_s8 }
 0xba4   :  { %729 = vrot.lane.b32.xlu1 %v1998_v62, %s1777_s8 }
 0xba5   :  { %599 = vrot.lane.b32.xlu0 %v1973_v30, %s1777_s8 }
 0xba8   :  { %989 = vrot.lane.b32.xlu1 %v2046_v1, %s1777_s8  ;;  %v1269_v1 = vld [vmem:[#allocation4 + $0xc] sm:$0x3] }
 0xba9   :  { %859 = vrot.lane.b32.xlu0 %v2022_v40, %s1777_s8 }
 0xbad   :  { %1119 = vrot.lane.b32.xlu0 %v1115_v43, %s1777_s8 }
 0xc06   :  { %v1222_v51 = vpop.permute.xlu1 %1221 }
 0xc07   :  { %v1217_v52 = vpop.permute.xlu0 %1216  ;;  %v1224_v54 = vsel %vm308_vm1, %v1222_v51, %v1621_v48 }
 0xc08   :  { %v1219_v55 = vsel %vm308_vm1, %v1619_v47, %v1217_v52  ;;  %v1241_v56 = vmul.f32 %v1224_v54, %v1113_v37 }
 0xc0a   :  { %v1231_v53 = vpop.permute.xlu1 %1230 }
 0xc0b   :  { %v1227_v18 = vpop.permute.xlu0 %1226 }
 0xc0c   :  { %v1233_v62 = vsel %vm308_vm1, %v1227_v18, %v1231_v53 }
 0xc0d   :  { %v1242_v30 = vmul.f32 %v1233_v62, %v1219_v55 }
 0xc0e   :  { %v1238_v57 = vpop.permute.xlu1 %1237 }
 0xc0f   :  { %v1243_v58 = vadd.f32 %v1242_v30, %v1241_v56  ;;  %v1235_v59 = vpop.permute.xlu0 %1234 }
 0xc10   :  { %v1240_v5 = vsel %vm308_vm1, %v1235_v59, %v1238_v57 }
 0xc11   :  { %1626 = vtanh.f32 %v1243_v58  ;;  %1256 = vst.msk [vmem:[#allocation15] sm:$0x3] %vm336_vm2, %v1243_v58  ;;  %1258 = vrot.lane.b32.xlu0 %v1243_v58, %s1777_s8 }
 0xc12   :  { %v470_v40 = vpop.permute.xlu1 %469 }
 0xc13   :  { %473 = vst.msk [vmem:[#allocation5 + $0xc] sm:$0x3] %vm336_vm2, %v470_v40  ;;  %v340_v60 = vpop.permute.xlu0 %339 }
 0xc14   :  { %343 = vst.msk [vmem:[#allocation5 + $0xe] sm:$0x3] %vm336_vm2, %v340_v60 }
 0xc16   :  { %v730_v61 = vpop.permute.xlu1 %729 }
 0xc17   :  { %733 = vst.msk [vmem:[#allocation5 + $0x8] sm:$0x3] %vm336_vm2, %v730_v61  ;;  %v600_v63 = vpop.permute.xlu0 %599 }
 0xc18   :  { %603 = vst.msk [vmem:[#allocation5 + $0xa] sm:$0x3] %vm336_vm2, %v600_v63 }
 0xc1a   :  { %v1277_v2 = vld [vmem:[#allocation5 + $0xc] sm:$0x3]  ;;  %v990_v3 = vpop.permute.xlu1 %989 }
 0xc1b   :  { %v1627_v4 = vpop.eup %1626  ;;  %v1285_v6 = vadd.f32 %v1277_v2, %v1269_v1  ;;  %993 = vst.msk [vmem:[#allocation5 + $0x4] sm:$0x3] %vm336_vm2, %v990_v3  ;;  %v860_v7 = vpop.permute.xlu0 %859  ;;  %v1278_v33 = vld [vmem:[#allocation5 + $0xe] sm:$0x3] }
 0xc1c   :  { %v1245_v9 = vmul.f32 %v1627_v4, %v1240_v5  ;;  %863 = vst.msk [vmem:[#allocation5 + $0x6] sm:$0x3] %vm336_vm2, %v860_v7 }
 0xc1d   :  { %1293 = vst.msk [vmem:[#allocation12 + $0xc] sm:$0x3] %vm336_vm2, %v1285_v6 }
 0xc1e   :  { %1247 = vst.msk [vmem:[#allocation4 + $0xe] sm:$0x3] %vm336_vm2, %v1245_v9  ;;  %1253 = vst.msk [vmem:[#allocation13] sm:$0x3] %vm336_vm2, %v1245_v9  ;;  %v1275_v11 = vld [vmem:[#allocation5 + $0x8] sm:$0x3]  ;;  %1249 = vrot.lane.b32.xlu1 %v1245_v9, %s1777_s8 }
 0xc1f   :  { %v1283_v13 = vadd.f32 %v1275_v11, %v1267_v10  ;;  %v1276_v15 = vld [vmem:[#allocation5 + $0xa] sm:$0x3]  ;;  %v1120_v16 = vpop.permute.xlu0 %1119 }
 0xc20   :  { %v1284_v19 = vadd.f32 %v1276_v15, %v1268_v14  ;;  %1123 = vst.msk [vmem:[#allocation5 + $0x2] sm:$0x3] %vm336_vm2, %v1120_v16 }
 0xc21   :  { %1291 = vst.msk [vmem:[#allocation12 + $0x8] sm:$0x3] %vm336_vm2, %v1283_v13 }
 0xc22   :  { %1292 = vst.msk [vmem:[#allocation12 + $0xa] sm:$0x3] %vm336_vm2, %v1284_v19  ;;  %v1273_v23 = vld [vmem:[#allocation5 + $0x4] sm:$0x3] }
 0xc23   :  { %v1281_v24 = vadd.f32 %v1273_v23, %v1265_v21  ;;  %v1274_v26 = vld [vmem:[#allocation5 + $0x6] sm:$0x3] }
 0xc24   :  { %v1282_v27 = vadd.f32 %v1274_v26, %v1266_v25 }
 0xc25   :  { %v1270_v31 = vld [vmem:[#allocation4 + $0xe] sm:$0x3]  ;;  %1289 = vst.msk [vmem:[#allocation12 + $0x4] sm:$0x3] %vm336_vm2, %v1281_v24 }
 0xc26   :  { %v1286_v34 = vadd.f32 %v1278_v33, %v1270_v31  ;;  %1290 = vst.msk [vmem:[#allocation12 + $0x6] sm:$0x3] %vm336_vm2, %v1282_v27 }
 0xc27   :  { %v1272_v36 = vld [vmem:[#allocation5 + $0x2] sm:$0x3] }
 0xc28   :  { %1294 = vst.msk [vmem:[#allocation12 + $0xe] sm:$0x3] %vm336_vm2, %v1286_v34  ;;  %v1280_v37 = vadd.f32 %v1272_v36, %v1264_v35 }
 0xc2a   :  { %1288 = vst.msk [vmem:[#allocation12 + $0x2] sm:$0x3] %vm336_vm2, %v1280_v37 }
 0xc83   :  { %v1259_v38 = vpop.permute.xlu0 %1258 }
 0xc84   :  { %1262 = vst.msk [vmem:[#allocation15 + $0x2] sm:$0x3] %vm336_vm2, %v1259_v38 }
 0xc90   :  { %v1250_v39 = vpop.permute.xlu1 %1249 }
 0xc91   :  { %1252 = vst.msk [vmem:[#allocation5] sm:$0x3] %vm336_vm2, %v1250_v39  ;;  %1255 = vst.msk [vmem:[#allocation13 + $0x2] sm:$0x3] %vm336_vm2, %v1250_v39 }
 0xc92   :  { %1705 = shalt.err (!%p1702_p0)
}
 0xc93   :  { %s1706_s1 = scalar_lea.hbm %s2167_s5, 64 }
 0xc94   :  { %p1707_p1 = scmp.ne.s32.totalorder %s2167_s5, %s1706_s1  ;;  %p1710_p2 = scmp.lt.u32.totalorder %s1706_s1, %s2167_s5 }
 0xc96   :  { %p1712_p3 = pnand %p1710_p2, %p1707_p1 }
 0xc98   :  { %1715 = shalt.err (!%p1712_p3)
}
 0xc99   :  { %s1781_s25 = smov 2   ;;  %s1716_s28 = scalar_lea.vmem %s2107_s17, 64 }
 0xc9a   :  { %1318 = dma.vmem_to_hbm [thread:$0]  %s1313_s15, 64, %s2167_s5, [#allocation14], %s1778_s13, %s1778_s13, %s1781_s25  }
 0xc9b   :  { %p1717_p4 = scmp.ne.s32.totalorder %s2107_s17, %s1716_s28  ;;  %p1721_p5 = scmp.lt.s32.totalorder %s2107_s17, %s2107_s17 }
 0xc9c   :  { %p1722_p6 = scmp.lt.s32.totalorder %s1716_s28, %s1716_s28 }
 0xc9e   :  { %p1723_p7 = por %p1722_p6, %p1721_p5 }
 0xca0   :  { %p1724_p8 = pnand %p1723_p7, %p1717_p4 }
 0xca2   :  { %1727 = shalt.err (!%p1724_p8)
}
 0xca3   :  { %s1728_s9 = scalar_lea.hbm %s2168_s6, 64 }
 0xca4   :  { %p1729_p9 = scmp.ne.s32.totalorder %s2168_s6, %s1728_s9  ;;  %p1732_p10 = scmp.lt.u32.totalorder %s1728_s9, %s2168_s6 }
 0xca6   :  { %p1734_p11 = pnand %p1732_p10, %p1729_p9 }
 0xca8   :  { %1737 = shalt.err (!%p1734_p11)
}
 0xca9   :  { %1330 = dma.vmem_to_hbm [thread:$0]  %s2107_s17, 64, %s2168_s6, [#allocation14], %s1778_s13, %s1778_s13, %s1781_s25   ;;  %v1263_v41 = vld [vmem:[#allocation4] sm:$0x3]  ;;  %v1271_v42 = vld [vmem:[#allocation5] sm:$0x3] }
 0xcaa   :  { %s1782_s7 = smov [#allocation12]   ;;  %v1279_v43 = vadd.f32 %v1271_v42, %v1263_v41 }
 0xcab   :  { %s1300_s3 = sshll.u32 %s1782_s7, 4  ;;  %s1301_s3 = int_to_ptr.vmem [resolvable:$true] %s1300_s3 }
 0xcac   :  { %1287 = vst.msk [vmem:[#allocation12] sm:$0x3] %vm336_vm2, %v1279_v43  ;;  %s1738_s8 = scalar_lea.vmem %s1301_s3, 256  ;;  %p1743_p13 = scmp.lt.s32.totalorder %s1301_s3, %s1301_s3 }
 0xcad   :  { %p1739_p12 = scmp.ne.s32.totalorder %s1301_s3, %s1738_s8  ;;  %p1744_p0 = scmp.lt.s32.totalorder %s1738_s8, %s1738_s8 }
 0xcaf   :  { %p1745_p1 = por %p1744_p0, %p1743_p13 }
 0xcb1   :  { %p1746_p2 = pnand %p1745_p1, %p1739_p12 }
 0xcb3   :  { %1749 = shalt.err (!%p1746_p2)
}
 0xcb4   :  { %s1750_s16 = scalar_lea.hbm %s2166_s4, 256 }
 0xcb5   :  { %p1751_p3 = scmp.ne.s32.totalorder %s2166_s4, %s1750_s16  ;;  %p1754_p4 = scmp.lt.u32.totalorder %s1750_s16, %s2166_s4 }
 0xcb7   :  { %p1756_p5 = pnand %p1754_p4, %p1751_p3 }
 0xcb9   :  { %1759 = shalt.err (!%p1756_p5)
}
 0xcba   :  { %1306 = dma.vmem_to_hbm [thread:$0]  %s1301_s3, 256, %s2166_s4, [#allocation8], %s1778_s13, %s1778_s13, %s1781_s25  }
 0xcbb   :  { %1764 = dma.done.wait [#allocation8], 256  }
 0xcbc   :  { %1765 = vsyncadd [#allocation8], 4294967040 }
 0xcbd   :  { %1766 = dma.done.wait [#allocation14], 128  }
 0xcbe   :  { %1767 = vsyncadd [#allocation14], 4294967168 }
 0xcbf   :  { %1340 = vsyncpa [#allocation7], 1 }
 0xcc0   :  { %1341 = vsyncpa [#allocation10], 1 }
 0xcc1   :  { %1342 = vsyncpa [#allocation8], 1 }
 0xcc2   :  { %1343 = vsyncpa [#allocation14], 1 }

</bundles_post_ra>
